<compile_context>
chip_gen: v5e
topology: v5e:2x2
jax: 0.10.0
libtpu: 0.0.40
codegen_flags: <defaults>
</compile_context>

<pallas_src>
import functools

import jax
import jax.numpy as jnp
from jax.experimental import pallas as pl
from jax.experimental.pallas import tpu as pltpu


# --------------------------------------------------------------------------
# Fused kernel: normalize -> sentence LSTM -> document LSTM -> fc -> sigmoid
# --------------------------------------------------------------------------
def _fused_hier_lstm_kernel(emb_ref, s_wih_ref, s_b_ref, s_whh_ref,
                            d_wih_ref, d_b_ref, d_whh_ref,
                            fc_w_ref, fc_b_ref, out_ref, *, B, NS, L):
    """Single-invocation fused forward.

    emb_ref  : (L*NS*B, E)  embedded tokens, time-major; within a timestep the
                            rows are ordered s*B + b (sentence-major).
    s_wih_ref: (E, 4*Hs)    s_b_ref: (1, 4*Hs)   s_whh_ref: (Hs, 4*Hs)
    d_wih_ref: (Hs, 4*Hd)   d_b_ref: (1, 4*Hd)   d_whh_ref: (Hd, 4*Hd)
    fc_w_ref : (Hd, O)      fc_b_ref: (1, O)
    out_ref  : (B, O)
    """
    Hs = s_whh_ref.shape[0]
    Hd = d_whh_ref.shape[0]
    BS = NS * B

    # ---- L2 normalize every embedding row (F.normalize, p=2, eps=1e-12) ----
    x = emb_ref[...]                                            # (L*NS*B, E)
    norm = jnp.sqrt(jnp.sum(x * x, axis=1, keepdims=True))
    x = x / jnp.maximum(norm, 1e-12)

    # ---- sentence-LSTM input projection, hoisted to ONE MXU matmul ----------
    xg_s = jnp.dot(x, s_wih_ref[...],
                   preferred_element_type=jnp.float32) + s_b_ref[...]  # (L*BS, 4Hs)

    s_whh = s_whh_ref[...]
    d_whh = d_whh_ref[...]

    def lstm_cell(pre_gates, h, c, w_hh, H):
        # pre_gates already holds x@W_ih + bias; only h@W_hh sits on the
        # serial critical path (one small MXU push per step).
        gates = pre_gates + jnp.dot(h, w_hh, preferred_element_type=jnp.float32)
        sg = jax.nn.sigmoid(gates)          # full-width (.., 4H): one EUP pass
        tg = jnp.tanh(gates)                # full-width: one EUP pass
        i_g = sg[:, 0 * H:1 * H]
        f_g = sg[:, 1 * H:2 * H]
        g_g = tg[:, 2 * H:3 * H]
        o_g = sg[:, 3 * H:4 * H]
        c_new = f_g * c + i_g * g_g
        h_new = o_g * jnp.tanh(c_new)
        return h_new, c_new

    # ---- sentence-level LSTM: unrolled time loop, state in registers --------
    h = jnp.zeros((BS, Hs), jnp.float32)
    c = jnp.zeros((BS, Hs), jnp.float32)
    for t in range(L):                      # static unroll; 8-row aligned slices
        h, c = lstm_cell(xg_s[t * BS:(t + 1) * BS, :], h, c, s_whh, Hs)

    # ---- document-level LSTM over final sentence hidden states --------------
    # Hoisted input projection (+ bias) as a single matmul: (NS*B, Hs)@(Hs, 4Hd)
    xg_d = jnp.dot(h, d_wih_ref[...],
                   preferred_element_type=jnp.float32) + d_b_ref[...]   # (BS, 4Hd)

    hd = jnp.zeros((B, Hd), jnp.float32)
    cd = jnp.zeros((B, Hd), jnp.float32)
    for t in range(NS):                     # rows t*B:(t+1)*B = sentence t, all b
        hd, cd = lstm_cell(xg_d[t * B:(t + 1) * B, :], hd, cd, d_whh, Hd)

    # ---- fc + sigmoid head ---------------------------------------------------
    # TODO(synk): nn.Dropout is identity in eval mode; train-mode dropout not implemented.
    out_ref[...] = jax.nn.sigmoid(
        jnp.dot(hd, fc_w_ref[...], preferred_element_type=jnp.float32)
        + fc_b_ref[...])


# --------------------------------------------------------------------------
# Full forward pass (embedding gather + small layout transpose in XLA, all
# sequential work fused into one Pallas kernel)
# --------------------------------------------------------------------------
@jax.jit
def customized_lstm_forward(documents, params):
    B, NS, L = documents.shape
    E = params["embedding"].shape[1]
    O = params["fc_w"].shape[1]

    # Embedding lookup stays in XLA (per-token dynamic gather).  Re-order to
    # time-major / sentence-major (t, s*B + b) so every in-kernel slice is a
    # static, sublane-contiguous window.
    emb = params["embedding"][documents.reshape(-1, L)]          # (B*NS, L, E)
    emb = emb.reshape(B, NS, L, E).transpose(2, 1, 0, 3).reshape(L * NS * B, E)

    kernel = functools.partial(_fused_hier_lstm_kernel, B=B, NS=NS, L=L)
    vmem_spec = pl.BlockSpec(memory_space=pltpu.MemorySpace.VMEM)

    return pl.pallas_call(
        kernel,
        out_shape=jax.ShapeDtypeStruct((B, O), jnp.float32),
        in_specs=[vmem_spec] * 9,
        out_specs=vmem_spec,
    )(emb, params["s_w_ih"], params["s_b"], params["s_w_hh"],
      params["d_w_ih"], params["d_b"], params["d_w_hh"],
      params["fc_w"], params["fc_b"])


# --------------------------------------------------------------------------
# Pure-JAX reference (mirrors the PyTorch forward) for a correctness check
# --------------------------------------------------------------------------
def _reference_forward(documents, params):
    B, NS, L = documents.shape
    emb = params["embedding"][documents.reshape(-1, L)]
    norm = jnp.sqrt(jnp.sum(emb * emb, axis=2, keepdims=True))
    emb = emb / jnp.maximum(norm, 1e-12)

    def run_lstm(x, w_ih, w_hh, b):
        Bx, T, _ = x.shape
        H = w_hh.shape[0]
        h = jnp.zeros((Bx, H), jnp.float32)
        c = jnp.zeros((Bx, H), jnp.float32)
        for t in range(T):
            g = x[:, t, :] @ w_ih + h @ w_hh + b
            i = jax.nn.sigmoid(g[:, 0 * H:1 * H])
            f = jax.nn.sigmoid(g[:, 1 * H:2 * H])
            gg = jnp.tanh(g[:, 2 * H:3 * H])
            o = jax.nn.sigmoid(g[:, 3 * H:4 * H])
            c = f * c + i * gg
            h = o * jnp.tanh(c)
        return h

    sh = run_lstm(emb, params["s_w_ih"], params["s_w_hh"], params["s_b"])
    sh = sh.reshape(B, NS, -1)
    dh = run_lstm(sh, params["d_w_ih"], params["d_w_hh"], params["d_b"])
    return jax.nn.sigmoid(dh @ params["fc_w"] + params["fc_b"])


# --------------------------------------------------------------------------
# Deterministic parameter initialization
# --------------------------------------------------------------------------
def init_params(key, vocab_size, embedding_dim, sentence_hidden_dim,
                document_hidden_dim, output_dim):
    ks = jax.random.split(key, 10)
    u = lambda k, shape, s: jax.random.uniform(k, shape, jnp.float32, -s, s)

    return {
        "embedding": u(ks[0], (vocab_size, embedding_dim), 1.0),
        # sentence LSTM (PyTorch weights transposed to (in, 4H)); bias = b_ih + b_hh
        "s_w_ih": u(ks[1], (embedding_dim, 4 * sentence_hidden_dim), 0.25),
        "s_w_hh": u(ks[2], (sentence_hidden_dim, 4 * sentence_hidden_dim), 0.25),
        "s_b":    u(ks[3], (1, 4 * sentence_hidden_dim), 0.25),
        # document LSTM
        "d_w_ih": u(ks[4], (sentence_hidden_dim, 4 * document_hidden_dim), 0.25),
        "d_w_hh": u(ks[5], (document_hidden_dim, 4 * document_hidden_dim), 0.25),
        "d_b":    u(ks[6], (1, 4 * document_hidden_dim), 0.25),
        # fc head
        "fc_w":   u(ks[7], (document_hidden_dim, output_dim), 0.25),
        "fc_b":   u(ks[8], (1, output_dim), 0.25),
    }


if __name__ == "__main__":
    # Small shapes consistent with the module's forward
    batch = 2
    num_sentences = 4
    sentence_length = 8
    vocab_size = 50
    embedding_dim = 32
    sentence_hidden_dim = 32
    document_hidden_dim = 32
    output_dim = 4

    key = jax.random.PRNGKey(0)
    k_docs, k_params = jax.random.split(key)

    documents = jax.random.randint(
        k_docs, (batch, num_sentences, sentence_length), 0, vocab_size,
        dtype=jnp.int32)

    params = init_params(k_params, vocab_size, embedding_dim,
                         sentence_hidden_dim, document_hidden_dim, output_dim)

    out = customized_lstm_forward(documents, params)
    out = jax.block_until_ready(out)

    assert out.shape == (batch, output_dim)
    assert bool(jnp.all(jnp.isfinite(out)))
    assert bool(jnp.all((out >= 0.0) & (out <= 1.0)))

    ref_out = _reference_forward(documents, params)
    assert bool(jnp.allclose(out, ref_out, atol=1e-2, rtol=1e-2))

    print("KERNEL_OK")
</pallas_src>

<mosaic_0001>
module attributes {stable_mosaic.version = 11 : i64} {
  func.func @_fused_hier_lstm_kernel(%arg0: memref<64x32xf32, #tpu.memory_space<vmem>>, %arg1: memref<32x128xf32, #tpu.memory_space<vmem>>, %arg2: memref<1x128xf32, #tpu.memory_space<vmem>>, %arg3: memref<32x128xf32, #tpu.memory_space<vmem>>, %arg4: memref<32x128xf32, #tpu.memory_space<vmem>>, %arg5: memref<1x128xf32, #tpu.memory_space<vmem>>, %arg6: memref<32x128xf32, #tpu.memory_space<vmem>>, %arg7: memref<32x4xf32, #tpu.memory_space<vmem>>, %arg8: memref<1x4xf32, #tpu.memory_space<vmem>>, %arg9: memref<2x4xf32, #tpu.memory_space<vmem>>) attributes {dimension_semantics = [], scalar_prefetch = 0 : i64, scratch_operands = 0 : i64, tpu.core_type = #tpu.core_type<tc>} {
    %c0 = arith.constant 0 : index
    %c0_0 = arith.constant 0 : index
    %0 = vector.load %arg0[%c0, %c0_0] : memref<64x32xf32, #tpu.memory_space<vmem>>, vector<64x32xf32>
    %1 = arith.mulf %0, %0 : vector<64x32xf32>
    %cst = arith.constant dense<0.000000e+00> : vector<64xf32>
    %2 = vector.multi_reduction <add>, %1, %cst [1] : vector<64x32xf32> to vector<64xf32>
    %3 = vector.shape_cast %2 : vector<64xf32> to vector<64x1xf32>
    %4 = math.sqrt %3 : vector<64x1xf32>
    %cst_1 = arith.constant 9.99999996E-13 : f32
    %5 = vector.broadcast %cst_1 : f32 to vector<64x1xf32>
    %6 = arith.maximumf %4, %5 : vector<64x1xf32>
    %7 = vector.broadcast %6 : vector<64x1xf32> to vector<64x32xf32>
    %8 = arith.divf %0, %7 : vector<64x32xf32>
    %c0_2 = arith.constant 0 : index
    %c0_3 = arith.constant 0 : index
    %9 = vector.load %arg1[%c0_2, %c0_3] : memref<32x128xf32, #tpu.memory_space<vmem>>, vector<32x128xf32>
    %cst_4 = arith.constant dense<0.000000e+00> : vector<64x128xf32>
    %10 = tpu.matmul %8, %9, %cst_4 {dimension_numbers = #tpu.dot_dimension_numbers<[1], [0], [0], [1], [0, 0, 1, 1], [], []>} : vector<64x32xf32>, vector<32x128xf32>, vector<64x128xf32> -> vector<64x128xf32>
    %c0_5 = arith.constant 0 : index
    %c0_6 = arith.constant 0 : index
    %11 = vector.load %arg2[%c0_5, %c0_6] : memref<1x128xf32, #tpu.memory_space<vmem>>, vector<1x128xf32>
    %12 = vector.broadcast %11 : vector<1x128xf32> to vector<64x128xf32>
    %13 = arith.addf %10, %12 : vector<64x128xf32>
    %c0_7 = arith.constant 0 : index
    %c0_8 = arith.constant 0 : index
    %14 = vector.load %arg3[%c0_7, %c0_8] : memref<32x128xf32, #tpu.memory_space<vmem>>, vector<32x128xf32>
    %c0_9 = arith.constant 0 : index
    %c0_10 = arith.constant 0 : index
    %15 = vector.load %arg6[%c0_9, %c0_10] : memref<32x128xf32, #tpu.memory_space<vmem>>, vector<32x128xf32>
    %cst_11 = arith.constant 0.000000e+00 : f32
    %16 = vector.broadcast %cst_11 : f32 to vector<8x32xf32>
    %cst_12 = arith.constant 0.000000e+00 : f32
    %17 = vector.broadcast %cst_12 : f32 to vector<8x32xf32>
    %18 = vector.extract_strided_slice %13 {offsets = [0, 0], sizes = [8, 128], strides = [1, 1]} : vector<64x128xf32> to vector<8x128xf32>
    %cst_13 = arith.constant dense<0.000000e+00> : vector<8x128xf32>
    %19 = tpu.matmul %16, %14, %cst_13 {dimension_numbers = #tpu.dot_dimension_numbers<[1], [0], [0], [1], [0, 0, 1, 1], [], []>} : vector<8x32xf32>, vector<32x128xf32>, vector<8x128xf32> -> vector<8x128xf32>
    %20 = arith.addf %18, %19 : vector<8x128xf32>
    %21 = arith.negf %20 : vector<8x128xf32>
    %22 = math.exp %21 : vector<8x128xf32>
    %cst_14 = arith.constant 1.000000e+00 : f32
    %23 = vector.broadcast %cst_14 : f32 to vector<8x128xf32>
    %24 = arith.addf %23, %22 : vector<8x128xf32>
    %25 = arith.divf %23, %24 : vector<8x128xf32>
    %26 = math.tanh %20 : vector<8x128xf32>
    %27 = vector.extract_strided_slice %25 {offsets = [0, 0], sizes = [8, 32], strides = [1, 1]} : vector<8x128xf32> to vector<8x32xf32>
    %28 = vector.extract_strided_slice %25 {offsets = [0, 32], sizes = [8, 32], strides = [1, 1]} : vector<8x128xf32> to vector<8x32xf32>
    %29 = vector.extract_strided_slice %26 {offsets = [0, 64], sizes = [8, 32], strides = [1, 1]} : vector<8x128xf32> to vector<8x32xf32>
    %30 = vector.extract_strided_slice %25 {offsets = [0, 96], sizes = [8, 32], strides = [1, 1]} : vector<8x128xf32> to vector<8x32xf32>
    %31 = arith.mulf %28, %17 : vector<8x32xf32>
    %32 = arith.mulf %27, %29 : vector<8x32xf32>
    %33 = arith.addf %31, %32 : vector<8x32xf32>
    %34 = math.tanh %33 : vector<8x32xf32>
    %35 = arith.mulf %30, %34 : vector<8x32xf32>
    %36 = vector.extract_strided_slice %13 {offsets = [8, 0], sizes = [8, 128], strides = [1, 1]} : vector<64x128xf32> to vector<8x128xf32>
    %cst_15 = arith.constant dense<0.000000e+00> : vector<8x128xf32>
    %37 = tpu.matmul %35, %14, %cst_15 {dimension_numbers = #tpu.dot_dimension_numbers<[1], [0], [0], [1], [0, 0, 1, 1], [], []>} : vector<8x32xf32>, vector<32x128xf32>, vector<8x128xf32> -> vector<8x128xf32>
    %38 = arith.addf %36, %37 : vector<8x128xf32>
    %39 = arith.negf %38 : vector<8x128xf32>
    %40 = math.exp %39 : vector<8x128xf32>
    %cst_16 = arith.constant 1.000000e+00 : f32
    %41 = vector.broadcast %cst_16 : f32 to vector<8x128xf32>
    %42 = arith.addf %41, %40 : vector<8x128xf32>
    %43 = arith.divf %41, %42 : vector<8x128xf32>
    %44 = math.tanh %38 : vector<8x128xf32>
    %45 = vector.extract_strided_slice %43 {offsets = [0, 0], sizes = [8, 32], strides = [1, 1]} : vector<8x128xf32> to vector<8x32xf32>
    %46 = vector.extract_strided_slice %43 {offsets = [0, 32], sizes = [8, 32], strides = [1, 1]} : vector<8x128xf32> to vector<8x32xf32>
    %47 = vector.extract_strided_slice %44 {offsets = [0, 64], sizes = [8, 32], strides = [1, 1]} : vector<8x128xf32> to vector<8x32xf32>
    %48 = vector.extract_strided_slice %43 {offsets = [0, 96], sizes = [8, 32], strides = [1, 1]} : vector<8x128xf32> to vector<8x32xf32>
    %49 = arith.mulf %46, %33 : vector<8x32xf32>
    %50 = arith.mulf %45, %47 : vector<8x32xf32>
    %51 = arith.addf %49, %50 : vector<8x32xf32>
    %52 = math.tanh %51 : vector<8x32xf32>
    %53 = arith.mulf %48, %52 : vector<8x32xf32>
    %54 = vector.extract_strided_slice %13 {offsets = [16, 0], sizes = [8, 128], strides = [1, 1]} : vector<64x128xf32> to vector<8x128xf32>
    %cst_17 = arith.constant dense<0.000000e+00> : vector<8x128xf32>
    %55 = tpu.matmul %53, %14, %cst_17 {dimension_numbers = #tpu.dot_dimension_numbers<[1], [0], [0], [1], [0, 0, 1, 1], [], []>} : vector<8x32xf32>, vector<32x128xf32>, vector<8x128xf32> -> vector<8x128xf32>
    %56 = arith.addf %54, %55 : vector<8x128xf32>
    %57 = arith.negf %56 : vector<8x128xf32>
    %58 = math.exp %57 : vector<8x128xf32>
    %cst_18 = arith.constant 1.000000e+00 : f32
    %59 = vector.broadcast %cst_18 : f32 to vector<8x128xf32>
    %60 = arith.addf %59, %58 : vector<8x128xf32>
    %61 = arith.divf %59, %60 : vector<8x128xf32>
    %62 = math.tanh %56 : vector<8x128xf32>
    %63 = vector.extract_strided_slice %61 {offsets = [0, 0], sizes = [8, 32], strides = [1, 1]} : vector<8x128xf32> to vector<8x32xf32>
    %64 = vector.extract_strided_slice %61 {offsets = [0, 32], sizes = [8, 32], strides = [1, 1]} : vector<8x128xf32> to vector<8x32xf32>
    %65 = vector.extract_strided_slice %62 {offsets = [0, 64], sizes = [8, 32], strides = [1, 1]} : vector<8x128xf32> to vector<8x32xf32>
    %66 = vector.extract_strided_slice %61 {offsets = [0, 96], sizes = [8, 32], strides = [1, 1]} : vector<8x128xf32> to vector<8x32xf32>
    %67 = arith.mulf %64, %51 : vector<8x32xf32>
    %68 = arith.mulf %63, %65 : vector<8x32xf32>
    %69 = arith.addf %67, %68 : vector<8x32xf32>
    %70 = math.tanh %69 : vector<8x32xf32>
    %71 = arith.mulf %66, %70 : vector<8x32xf32>
    %72 = vector.extract_strided_slice %13 {offsets = [24, 0], sizes = [8, 128], strides = [1, 1]} : vector<64x128xf32> to vector<8x128xf32>
    %cst_19 = arith.constant dense<0.000000e+00> : vector<8x128xf32>
    %73 = tpu.matmul %71, %14, %cst_19 {dimension_numbers = #tpu.dot_dimension_numbers<[1], [0], [0], [1], [0, 0, 1, 1], [], []>} : vector<8x32xf32>, vector<32x128xf32>, vector<8x128xf32> -> vector<8x128xf32>
    %74 = arith.addf %72, %73 : vector<8x128xf32>
    %75 = arith.negf %74 : vector<8x128xf32>
    %76 = math.exp %75 : vector<8x128xf32>
    %cst_20 = arith.constant 1.000000e+00 : f32
    %77 = vector.broadcast %cst_20 : f32 to vector<8x128xf32>
    %78 = arith.addf %77, %76 : vector<8x128xf32>
    %79 = arith.divf %77, %78 : vector<8x128xf32>
    %80 = math.tanh %74 : vector<8x128xf32>
    %81 = vector.extract_strided_slice %79 {offsets = [0, 0], sizes = [8, 32], strides = [1, 1]} : vector<8x128xf32> to vector<8x32xf32>
    %82 = vector.extract_strided_slice %79 {offsets = [0, 32], sizes = [8, 32], strides = [1, 1]} : vector<8x128xf32> to vector<8x32xf32>
    %83 = vector.extract_strided_slice %80 {offsets = [0, 64], sizes = [8, 32], strides = [1, 1]} : vector<8x128xf32> to vector<8x32xf32>
    %84 = vector.extract_strided_slice %79 {offsets = [0, 96], sizes = [8, 32], strides = [1, 1]} : vector<8x128xf32> to vector<8x32xf32>
    %85 = arith.mulf %82, %69 : vector<8x32xf32>
    %86 = arith.mulf %81, %83 : vector<8x32xf32>
    %87 = arith.addf %85, %86 : vector<8x32xf32>
    %88 = math.tanh %87 : vector<8x32xf32>
    %89 = arith.mulf %84, %88 : vector<8x32xf32>
    %90 = vector.extract_strided_slice %13 {offsets = [32, 0], sizes = [8, 128], strides = [1, 1]} : vector<64x128xf32> to vector<8x128xf32>
    %cst_21 = arith.constant dense<0.000000e+00> : vector<8x128xf32>
    %91 = tpu.matmul %89, %14, %cst_21 {dimension_numbers = #tpu.dot_dimension_numbers<[1], [0], [0], [1], [0, 0, 1, 1], [], []>} : vector<8x32xf32>, vector<32x128xf32>, vector<8x128xf32> -> vector<8x128xf32>
    %92 = arith.addf %90, %91 : vector<8x128xf32>
    %93 = arith.negf %92 : vector<8x128xf32>
    %94 = math.exp %93 : vector<8x128xf32>
    %cst_22 = arith.constant 1.000000e+00 : f32
    %95 = vector.broadcast %cst_22 : f32 to vector<8x128xf32>
    %96 = arith.addf %95, %94 : vector<8x128xf32>
    %97 = arith.divf %95, %96 : vector<8x128xf32>
    %98 = math.tanh %92 : vector<8x128xf32>
    %99 = vector.extract_strided_slice %97 {offsets = [0, 0], sizes = [8, 32], strides = [1, 1]} : vector<8x128xf32> to vector<8x32xf32>
    %100 = vector.extract_strided_slice %97 {offsets = [0, 32], sizes = [8, 32], strides = [1, 1]} : vector<8x128xf32> to vector<8x32xf32>
    %101 = vector.extract_strided_slice %98 {offsets = [0, 64], sizes = [8, 32], strides = [1, 1]} : vector<8x128xf32> to vector<8x32xf32>
    %102 = vector.extract_strided_slice %97 {offsets = [0, 96], sizes = [8, 32], strides = [1, 1]} : vector<8x128xf32> to vector<8x32xf32>
    %103 = arith.mulf %100, %87 : vector<8x32xf32>
    %104 = arith.mulf %99, %101 : vector<8x32xf32>
    %105 = arith.addf %103, %104 : vector<8x32xf32>
    %106 = math.tanh %105 : vector<8x32xf32>
    %107 = arith.mulf %102, %106 : vector<8x32xf32>
    %108 = vector.extract_strided_slice %13 {offsets = [40, 0], sizes = [8, 128], strides = [1, 1]} : vector<64x128xf32> to vector<8x128xf32>
    %cst_23 = arith.constant dense<0.000000e+00> : vector<8x128xf32>
    %109 = tpu.matmul %107, %14, %cst_23 {dimension_numbers = #tpu.dot_dimension_numbers<[1], [0], [0], [1], [0, 0, 1, 1], [], []>} : vector<8x32xf32>, vector<32x128xf32>, vector<8x128xf32> -> vector<8x128xf32>
    %110 = arith.addf %108, %109 : vector<8x128xf32>
    %111 = arith.negf %110 : vector<8x128xf32>
    %112 = math.exp %111 : vector<8x128xf32>
    %cst_24 = arith.constant 1.000000e+00 : f32
    %113 = vector.broadcast %cst_24 : f32 to vector<8x128xf32>
    %114 = arith.addf %113, %112 : vector<8x128xf32>
    %115 = arith.divf %113, %114 : vector<8x128xf32>
    %116 = math.tanh %110 : vector<8x128xf32>
    %117 = vector.extract_strided_slice %115 {offsets = [0, 0], sizes = [8, 32], strides = [1, 1]} : vector<8x128xf32> to vector<8x32xf32>
    %118 = vector.extract_strided_slice %115 {offsets = [0, 32], sizes = [8, 32], strides = [1, 1]} : vector<8x128xf32> to vector<8x32xf32>
    %119 = vector.extract_strided_slice %116 {offsets = [0, 64], sizes = [8, 32], strides = [1, 1]} : vector<8x128xf32> to vector<8x32xf32>
    %120 = vector.extract_strided_slice %115 {offsets = [0, 96], sizes = [8, 32], strides = [1, 1]} : vector<8x128xf32> to vector<8x32xf32>
    %121 = arith.mulf %118, %105 : vector<8x32xf32>
    %122 = arith.mulf %117, %119 : vector<8x32xf32>
    %123 = arith.addf %121, %122 : vector<8x32xf32>
    %124 = math.tanh %123 : vector<8x32xf32>
    %125 = arith.mulf %120, %124 : vector<8x32xf32>
    %126 = vector.extract_strided_slice %13 {offsets = [48, 0], sizes = [8, 128], strides = [1, 1]} : vector<64x128xf32> to vector<8x128xf32>
    %cst_25 = arith.constant dense<0.000000e+00> : vector<8x128xf32>
    %127 = tpu.matmul %125, %14, %cst_25 {dimension_numbers = #tpu.dot_dimension_numbers<[1], [0], [0], [1], [0, 0, 1, 1], [], []>} : vector<8x32xf32>, vector<32x128xf32>, vector<8x128xf32> -> vector<8x128xf32>
    %128 = arith.addf %126, %127 : vector<8x128xf32>
    %129 = arith.negf %128 : vector<8x128xf32>
    %130 = math.exp %129 : vector<8x128xf32>
    %cst_26 = arith.constant 1.000000e+00 : f32
    %131 = vector.broadcast %cst_26 : f32 to vector<8x128xf32>
    %132 = arith.addf %131, %130 : vector<8x128xf32>
    %133 = arith.divf %131, %132 : vector<8x128xf32>
    %134 = math.tanh %128 : vector<8x128xf32>
    %135 = vector.extract_strided_slice %133 {offsets = [0, 0], sizes = [8, 32], strides = [1, 1]} : vector<8x128xf32> to vector<8x32xf32>
    %136 = vector.extract_strided_slice %133 {offsets = [0, 32], sizes = [8, 32], strides = [1, 1]} : vector<8x128xf32> to vector<8x32xf32>
    %137 = vector.extract_strided_slice %134 {offsets = [0, 64], sizes = [8, 32], strides = [1, 1]} : vector<8x128xf32> to vector<8x32xf32>
    %138 = vector.extract_strided_slice %133 {offsets = [0, 96], sizes = [8, 32], strides = [1, 1]} : vector<8x128xf32> to vector<8x32xf32>
    %139 = arith.mulf %136, %123 : vector<8x32xf32>
    %140 = arith.mulf %135, %137 : vector<8x32xf32>
    %141 = arith.addf %139, %140 : vector<8x32xf32>
    %142 = math.tanh %141 : vector<8x32xf32>
    %143 = arith.mulf %138, %142 : vector<8x32xf32>
    %144 = vector.extract_strided_slice %13 {offsets = [56, 0], sizes = [8, 128], strides = [1, 1]} : vector<64x128xf32> to vector<8x128xf32>
    %cst_27 = arith.constant dense<0.000000e+00> : vector<8x128xf32>
    %145 = tpu.matmul %143, %14, %cst_27 {dimension_numbers = #tpu.dot_dimension_numbers<[1], [0], [0], [1], [0, 0, 1, 1], [], []>} : vector<8x32xf32>, vector<32x128xf32>, vector<8x128xf32> -> vector<8x128xf32>
    %146 = arith.addf %144, %145 : vector<8x128xf32>
    %147 = arith.negf %146 : vector<8x128xf32>
    %148 = math.exp %147 : vector<8x128xf32>
    %cst_28 = arith.constant 1.000000e+00 : f32
    %149 = vector.broadcast %cst_28 : f32 to vector<8x128xf32>
    %150 = arith.addf %149, %148 : vector<8x128xf32>
    %151 = arith.divf %149, %150 : vector<8x128xf32>
    %152 = math.tanh %146 : vector<8x128xf32>
    %153 = vector.extract_strided_slice %151 {offsets = [0, 0], sizes = [8, 32], strides = [1, 1]} : vector<8x128xf32> to vector<8x32xf32>
    %154 = vector.extract_strided_slice %151 {offsets = [0, 32], sizes = [8, 32], strides = [1, 1]} : vector<8x128xf32> to vector<8x32xf32>
    %155 = vector.extract_strided_slice %152 {offsets = [0, 64], sizes = [8, 32], strides = [1, 1]} : vector<8x128xf32> to vector<8x32xf32>
    %156 = vector.extract_strided_slice %151 {offsets = [0, 96], sizes = [8, 32], strides = [1, 1]} : vector<8x128xf32> to vector<8x32xf32>
    %157 = arith.mulf %154, %141 : vector<8x32xf32>
    %158 = arith.mulf %153, %155 : vector<8x32xf32>
    %159 = arith.addf %157, %158 : vector<8x32xf32>
    %160 = math.tanh %159 : vector<8x32xf32>
    %161 = arith.mulf %156, %160 : vector<8x32xf32>
    %c0_29 = arith.constant 0 : index
    %c0_30 = arith.constant 0 : index
    %162 = vector.load %arg4[%c0_29, %c0_30] : memref<32x128xf32, #tpu.memory_space<vmem>>, vector<32x128xf32>
    %cst_31 = arith.constant dense<0.000000e+00> : vector<8x128xf32>
    %163 = tpu.matmul %161, %162, %cst_31 {dimension_numbers = #tpu.dot_dimension_numbers<[1], [0], [0], [1], [0, 0, 1, 1], [], []>} : vector<8x32xf32>, vector<32x128xf32>, vector<8x128xf32> -> vector<8x128xf32>
    %c0_32 = arith.constant 0 : index
    %c0_33 = arith.constant 0 : index
    %164 = vector.load %arg5[%c0_32, %c0_33] : memref<1x128xf32, #tpu.memory_space<vmem>>, vector<1x128xf32>
    %165 = vector.broadcast %164 : vector<1x128xf32> to vector<8x128xf32>
    %166 = arith.addf %163, %165 : vector<8x128xf32>
    %cst_34 = arith.constant 0.000000e+00 : f32
    %167 = vector.broadcast %cst_34 : f32 to vector<2x32xf32>
    %cst_35 = arith.constant 0.000000e+00 : f32
    %168 = vector.broadcast %cst_35 : f32 to vector<2x32xf32>
    %169 = vector.extract_strided_slice %166 {offsets = [0, 0], sizes = [2, 128], strides = [1, 1]} : vector<8x128xf32> to vector<2x128xf32>
    %cst_36 = arith.constant dense<0.000000e+00> : vector<2x128xf32>
    %170 = tpu.matmul %167, %15, %cst_36 {dimension_numbers = #tpu.dot_dimension_numbers<[1], [0], [0], [1], [0, 0, 1, 1], [], []>} : vector<2x32xf32>, vector<32x128xf32>, vector<2x128xf32> -> vector<2x128xf32>
    %171 = arith.addf %169, %170 : vector<2x128xf32>
    %172 = arith.negf %171 : vector<2x128xf32>
    %173 = math.exp %172 : vector<2x128xf32>
    %cst_37 = arith.constant 1.000000e+00 : f32
    %174 = vector.broadcast %cst_37 : f32 to vector<2x128xf32>
    %175 = arith.addf %174, %173 : vector<2x128xf32>
    %176 = arith.divf %174, %175 : vector<2x128xf32>
    %177 = math.tanh %171 : vector<2x128xf32>
    %178 = vector.extract_strided_slice %176 {offsets = [0, 0], sizes = [2, 32], strides = [1, 1]} : vector<2x128xf32> to vector<2x32xf32>
    %179 = vector.extract_strided_slice %176 {offsets = [0, 32], sizes = [2, 32], strides = [1, 1]} : vector<2x128xf32> to vector<2x32xf32>
    %180 = vector.extract_strided_slice %177 {offsets = [0, 64], sizes = [2, 32], strides = [1, 1]} : vector<2x128xf32> to vector<2x32xf32>
    %181 = vector.extract_strided_slice %176 {offsets = [0, 96], sizes = [2, 32], strides = [1, 1]} : vector<2x128xf32> to vector<2x32xf32>
    %182 = arith.mulf %179, %168 : vector<2x32xf32>
    %183 = arith.mulf %178, %180 : vector<2x32xf32>
    %184 = arith.addf %182, %183 : vector<2x32xf32>
    %185 = math.tanh %184 : vector<2x32xf32>
    %186 = arith.mulf %181, %185 : vector<2x32xf32>
    %187 = vector.extract_strided_slice %166 {offsets = [2, 0], sizes = [2, 128], strides = [1, 1]} : vector<8x128xf32> to vector<2x128xf32>
    %cst_38 = arith.constant dense<0.000000e+00> : vector<2x128xf32>
    %188 = tpu.matmul %186, %15, %cst_38 {dimension_numbers = #tpu.dot_dimension_numbers<[1], [0], [0], [1], [0, 0, 1, 1], [], []>} : vector<2x32xf32>, vector<32x128xf32>, vector<2x128xf32> -> vector<2x128xf32>
    %189 = arith.addf %187, %188 : vector<2x128xf32>
    %190 = arith.negf %189 : vector<2x128xf32>
    %191 = math.exp %190 : vector<2x128xf32>
    %cst_39 = arith.constant 1.000000e+00 : f32
    %192 = vector.broadcast %cst_39 : f32 to vector<2x128xf32>
    %193 = arith.addf %192, %191 : vector<2x128xf32>
    %194 = arith.divf %192, %193 : vector<2x128xf32>
    %195 = math.tanh %189 : vector<2x128xf32>
    %196 = vector.extract_strided_slice %194 {offsets = [0, 0], sizes = [2, 32], strides = [1, 1]} : vector<2x128xf32> to vector<2x32xf32>
    %197 = vector.extract_strided_slice %194 {offsets = [0, 32], sizes = [2, 32], strides = [1, 1]} : vector<2x128xf32> to vector<2x32xf32>
    %198 = vector.extract_strided_slice %195 {offsets = [0, 64], sizes = [2, 32], strides = [1, 1]} : vector<2x128xf32> to vector<2x32xf32>
    %199 = vector.extract_strided_slice %194 {offsets = [0, 96], sizes = [2, 32], strides = [1, 1]} : vector<2x128xf32> to vector<2x32xf32>
    %200 = arith.mulf %197, %184 : vector<2x32xf32>
    %201 = arith.mulf %196, %198 : vector<2x32xf32>
    %202 = arith.addf %200, %201 : vector<2x32xf32>
    %203 = math.tanh %202 : vector<2x32xf32>
    %204 = arith.mulf %199, %203 : vector<2x32xf32>
    %205 = vector.extract_strided_slice %166 {offsets = [4, 0], sizes = [2, 128], strides = [1, 1]} : vector<8x128xf32> to vector<2x128xf32>
    %cst_40 = arith.constant dense<0.000000e+00> : vector<2x128xf32>
    %206 = tpu.matmul %204, %15, %cst_40 {dimension_numbers = #tpu.dot_dimension_numbers<[1], [0], [0], [1], [0, 0, 1, 1], [], []>} : vector<2x32xf32>, vector<32x128xf32>, vector<2x128xf32> -> vector<2x128xf32>
    %207 = arith.addf %205, %206 : vector<2x128xf32>
    %208 = arith.negf %207 : vector<2x128xf32>
    %209 = math.exp %208 : vector<2x128xf32>
    %cst_41 = arith.constant 1.000000e+00 : f32
    %210 = vector.broadcast %cst_41 : f32 to vector<2x128xf32>
    %211 = arith.addf %210, %209 : vector<2x128xf32>
    %212 = arith.divf %210, %211 : vector<2x128xf32>
    %213 = math.tanh %207 : vector<2x128xf32>
    %214 = vector.extract_strided_slice %212 {offsets = [0, 0], sizes = [2, 32], strides = [1, 1]} : vector<2x128xf32> to vector<2x32xf32>
    %215 = vector.extract_strided_slice %212 {offsets = [0, 32], sizes = [2, 32], strides = [1, 1]} : vector<2x128xf32> to vector<2x32xf32>
    %216 = vector.extract_strided_slice %213 {offsets = [0, 64], sizes = [2, 32], strides = [1, 1]} : vector<2x128xf32> to vector<2x32xf32>
    %217 = vector.extract_strided_slice %212 {offsets = [0, 96], sizes = [2, 32], strides = [1, 1]} : vector<2x128xf32> to vector<2x32xf32>
    %218 = arith.mulf %215, %202 : vector<2x32xf32>
    %219 = arith.mulf %214, %216 : vector<2x32xf32>
    %220 = arith.addf %218, %219 : vector<2x32xf32>
    %221 = math.tanh %220 : vector<2x32xf32>
    %222 = arith.mulf %217, %221 : vector<2x32xf32>
    %223 = vector.extract_strided_slice %166 {offsets = [6, 0], sizes = [2, 128], strides = [1, 1]} : vector<8x128xf32> to vector<2x128xf32>
    %cst_42 = arith.constant dense<0.000000e+00> : vector<2x128xf32>
    %224 = tpu.matmul %222, %15, %cst_42 {dimension_numbers = #tpu.dot_dimension_numbers<[1], [0], [0], [1], [0, 0, 1, 1], [], []>} : vector<2x32xf32>, vector<32x128xf32>, vector<2x128xf32> -> vector<2x128xf32>
    %225 = arith.addf %223, %224 : vector<2x128xf32>
    %226 = arith.negf %225 : vector<2x128xf32>
    %227 = math.exp %226 : vector<2x128xf32>
    %cst_43 = arith.constant 1.000000e+00 : f32
    %228 = vector.broadcast %cst_43 : f32 to vector<2x128xf32>
    %229 = arith.addf %228, %227 : vector<2x128xf32>
    %230 = arith.divf %228, %229 : vector<2x128xf32>
    %231 = math.tanh %225 : vector<2x128xf32>
    %232 = vector.extract_strided_slice %230 {offsets = [0, 0], sizes = [2, 32], strides = [1, 1]} : vector<2x128xf32> to vector<2x32xf32>
    %233 = vector.extract_strided_slice %230 {offsets = [0, 32], sizes = [2, 32], strides = [1, 1]} : vector<2x128xf32> to vector<2x32xf32>
    %234 = vector.extract_strided_slice %231 {offsets = [0, 64], sizes = [2, 32], strides = [1, 1]} : vector<2x128xf32> to vector<2x32xf32>
    %235 = vector.extract_strided_slice %230 {offsets = [0, 96], sizes = [2, 32], strides = [1, 1]} : vector<2x128xf32> to vector<2x32xf32>
    %236 = arith.mulf %233, %220 : vector<2x32xf32>
    %237 = arith.mulf %232, %234 : vector<2x32xf32>
    %238 = arith.addf %236, %237 : vector<2x32xf32>
    %239 = math.tanh %238 : vector<2x32xf32>
    %240 = arith.mulf %235, %239 : vector<2x32xf32>
    %c0_44 = arith.constant 0 : index
    %c0_45 = arith.constant 0 : index
    %241 = vector.load %arg7[%c0_44, %c0_45] : memref<32x4xf32, #tpu.memory_space<vmem>>, vector<32x4xf32>
    %cst_46 = arith.constant dense<0.000000e+00> : vector<2x4xf32>
    %242 = tpu.matmul %240, %241, %cst_46 {dimension_numbers = #tpu.dot_dimension_numbers<[1], [0], [0], [1], [0, 0, 1, 1], [], []>} : vector<2x32xf32>, vector<32x4xf32>, vector<2x4xf32> -> vector<2x4xf32>
    %c0_47 = arith.constant 0 : index
    %c0_48 = arith.constant 0 : index
    %243 = vector.load %arg8[%c0_47, %c0_48] : memref<1x4xf32, #tpu.memory_space<vmem>>, vector<1x4xf32>
    %244 = vector.broadcast %243 : vector<1x4xf32> to vector<2x4xf32>
    %245 = arith.addf %242, %244 : vector<2x4xf32>
    %246 = arith.negf %245 : vector<2x4xf32>
    %247 = math.exp %246 : vector<2x4xf32>
    %cst_49 = arith.constant 1.000000e+00 : f32
    %248 = vector.broadcast %cst_49 : f32 to vector<2x4xf32>
    %249 = arith.addf %248, %247 : vector<2x4xf32>
    %250 = arith.divf %248, %249 : vector<2x4xf32>
    %c0_50 = arith.constant 0 : index
    %c0_51 = arith.constant 0 : index
    %251 = vector.load %arg9[%c0_50, %c0_51] : memref<2x4xf32, #tpu.memory_space<vmem>>, vector<2x4xf32>
    tpu.vector_store %arg9[%c0_50, %c0_51], %250 {strides = array<i32>} : memref<2x4xf32, #tpu.memory_space<vmem>>, vector<2x4xf32>,
    return
  }
}

</mosaic_0001>

<bundles_post_ra>
// kernel: customized_lstm_forward.1
= control target key start
LH: loop header
LB: loop body
LE: loop exit
PB: predicated region body
PF: predicated region fallthrough
CT: control target
= control target key end

     0   :  { %vm49_vm0 = vcmask 261120   ;;  %s1787_s0 = inlined_call_operand.vmem [shape: f32[64,32], index: 0, kind: input, shape index: {}]   ;;  %s1788_s1 = inlined_call_operand.vmem [shape: f32[32,128], index: 1, kind: input, shape index: {}]   ;;  %s1789_s2 = inlined_call_operand.vmem [shape: f32[1,128], index: 2, kind: input, shape index: {}]   ;;  %s1790_s3 = inlined_call_operand.vmem [shape: f32[32,128], index: 3, kind: input, shape index: {}]   ;;  %s1791_s4 = inlined_call_operand.vmem [shape: f32[32,128], index: 4, kind: input, shape index: {}]   ;;  %s1792_s5 = inlined_call_operand.vmem [shape: f32[1,128], index: 5, kind: input, shape index: {}]   ;;  %s1793_s6 = inlined_call_operand.vmem [shape: f32[32,128], index: 6, kind: input, shape index: {}]   ;;  %s1794_s7 = inlined_call_operand.vmem [shape: f32[32,4], index: 7, kind: input, shape index: {}]   ;;  %s1795_s8 = inlined_call_operand.vmem [shape: f32[1,4], index: 8, kind: input, shape index: {}]   ;;  %s1796_s9 = inlined_call_operand.hbm [shape: f32[2,4], index: 9, kind: output, shape index: {}]  }
   0x1   :  { %v1512_v0 = vld [vmem:[%s1787_s0] sm:$0xff] }
   0x2   :  { %v41_v1 = vmul.f32 %v1512_v0, %v1512_v0 }
   0x3   :  { %14 = vsyncpa [#allocation3], 0  ;;  %v301_v3 = vld [vmem:[%s1788_s1 + $0x18] sm:$0xff]  ;;  %v300_v4 = vld [vmem:[%s1788_s1 + $0x10] sm:$0xff]  ;;  %v1455_v16 = vmov 0.0   ;;  %s1456_s27 = smov 64  }
   0x4   :  { %v50_v2 = vsel %vm49_vm0, %v41_v1, 0.0  ;;  %v1526_v5 = vld [vmem:[%s1790_s3 + $0x18] sm:$0xff]  ;;  %342 = vmatpush.msra.mxu0 %v301_v3  ;;  %v1532_v6 = vld [vmem:[%s1790_s3 + $0x10] sm:$0xff]  ;;  %v299_v7 = vld [vmem:[%s1788_s1 + $0x8] sm:$0xff]  ;;  %1285 = vmatpush.msra.mxu3 %v301_v3  ;;  %s1457_s28 = smov 32  }
   0x5   :  { %51 = vadd.xlane.f32.xlu0 %v50_v2  ;;  %394 = vmatpush.msra.mxu1 %v1526_v5  ;;  %v1540_v8 = vld [vmem:[%s1790_s3 + $0x8] sm:$0xff]  ;;  %v298_v9 = vld [vmem:[%s1788_s1] sm:$0xff] }
   0x6   :  { %457 = vmatpush.msra.mxu2 %v1526_v5  ;;  %343 = vmatpush.msra.mxu0 %v300_v4  ;;  %v1556_v14 = vld [vmem:[%s1790_s3] sm:$0xff]  ;;  %v34_v56 = vld [vmem:[%s1787_s0 + $0x8] sm:$0xff] }
   0x7   :  { %395 = vmatpush.msra.mxu1 %v1532_v6  ;;  %1286 = vmatpush.msra.mxu3 %v300_v4  ;;  %v1579_v35 = vld [vmem:[%s1789_s2] ss:$0 sm:$0xff]  ;;  %v42_v57 = vmul.f32 %v34_v56, %v34_v56 }
   0x8   :  { %458 = vmatpush.msra.mxu2 %v1532_v6  ;;  %344 = vmatpush.msra.mxu0 %v299_v7 }
   0x9   :  { %396 = vmatpush.msra.mxu1 %v1540_v8  ;;  %1287 = vmatpush.msra.mxu3 %v299_v7  ;;  %v53_v58 = vsel %vm49_vm0, %v42_v57, 0.0 }
   0xa   :  { %459 = vmatpush.msra.mxu2 %v1540_v8  ;;  %345 = vmatpush.msra.mxu0 %v298_v9 }
   0xb   :  { %1288 = vmatpush.msra.mxu3 %v298_v9  ;;  %397 = vmatpush.msra.mxu1 %v1556_v14 }
   0xc   :  { %460 = vmatpush.msra.mxu2 %v1556_v14  ;;  %398 = vmatmul.f32.vlgmr.msra.gmra.mxu1 %v1455_v16 }
   0xd   :  { %520 = vmatpush.msrb.mxu3 %v1526_v5  ;;  %583 = vmatpush.msrb.mxu1 %v1526_v5 }
   0xe   :  { %646 = vmatpush.msrb.mxu2 %v1526_v5  ;;  %54 = vadd.xlane.f32.xlu2 %v53_v58 }
   0xf   :  { %521 = vmatpush.msrb.mxu3 %v1532_v6  ;;  %584 = vmatpush.msrb.mxu1 %v1532_v6 }
  0x10   :  { %647 = vmatpush.msrb.mxu2 %v1532_v6 }
  0x11   :  { %522 = vmatpush.msrb.mxu3 %v1540_v8  ;;  %585 = vmatpush.msrb.mxu1 %v1540_v8 }
  0x12   :  { %648 = vmatpush.msrb.mxu2 %v1540_v8 }
  0x13   :  { %523 = vmatpush.msrb.mxu3 %v1556_v14  ;;  %586 = vmatpush.msrb.mxu1 %v1556_v14 }
  0x14   :  { %649 = vmatpush.msrb.mxu2 %v1556_v14 }
  0x15   :  { %772 = vmatpush.msra.mxu1 %v1526_v5 }
  0x17   :  { %773 = vmatpush.msra.mxu1 %v1532_v6 }
  0x19   :  { %774 = vmatpush.msra.mxu1 %v1540_v8 }
  0x1b   :  { %775 = vmatpush.msra.mxu1 %v1556_v14 }
  0x78   :  { %v52_v10 = vpop.xlane.xlu0 %51 }
  0x79   :  { %1296 = vrsqrt.f32 %v52_v10  ;;  %vm81_vm1 = vcmp.eq.f32.partialorder %v52_v10, inf  ;;  %v84_v20 = vand.u32 2147483648, %v52_v10  ;;  %vm83_vm2 = vcmp.eq.f32.partialorder %v52_v10, 0.0 }
  0x7f   :  { %v1297_v11 = vpop.eup %1296 }
  0x80   :  { %v75_v12 = vmul.f32 %v1297_v11, %v52_v10 }
  0x81   :  { %v55_v63 = vpop.xlane.xlu2 %54 }
  0x82   :  { %v76_v13 = vmul.f32 %v1297_v11, %v75_v12  ;;  %vm93_vm11 = vcmp.eq.f32.partialorder %v55_v63, inf  ;;  %v96_v9 = vand.u32 2147483648, %v55_v63  ;;  %vm95_vm12 = vcmp.eq.f32.partialorder %v55_v63, 0.0 }
  0x84   :  { %v77_v15 = vmul.f32 0.5, %v76_v13 }
  0x86   :  { %v78_v17 = vsub.f32 1.5, %v77_v15 }
  0x88   :  { %v79_v18 = vmul.f32 %v1297_v11, %v78_v17 }
  0x89   :  { %v399_v37 = vpop.f32.mrf.mxu1 }
  0x8a   :  { %v80_v19 = vmul.f32 %v79_v18, %v52_v10 }
  0x8c   :  { %v82_v21 = vsel %vm81_vm1, %v52_v10, %v80_v19 }
  0x8d   :  { %v85_v22 = vsel %vm83_vm2, %v84_v20, %v82_v21 }
  0x8e   :  { %v170_v23 = vmax.f32 %v85_v22, 1e-12 }
  0x90   :  { %1298 = vrcp.f32 %v170_v23  ;;  %v189_v27 = vand.u32 2147483648, %v170_v23  ;;  %v187_v29 = vand.u32 2147483647, %v170_v23  ;;  %vm183_vm4 = vweird.f32 %v170_v23 }
  0x92   :  { %v190_v31 = vor.u32 1.1754944e-38, %v189_v27  ;;  %vm188_vm6 = vcmp.eq.f32.partialorder %v187_v29, 8.507059e+37 }
  0x96   :  { %v1299_v24 = vpop.eup %1298 }
  0x97   :  { %v179_v25 = vmul.f32 %v1299_v24, %v170_v23  ;;  %vm184_vm3 = vweird.f32 %v1299_v24 }
  0x98   :  { %vm185_vm5 = vmor %vm183_vm4, %vm184_vm3 }
  0x99   :  { %v180_v26 = vsub.f32 1.0, %v179_v25 }
  0x9b   :  { %v181_v28 = vmul.f32 %v1299_v24, %v180_v26 }
  0x9d   :  { %v182_v30 = vadd.f32 %v1299_v24, %v181_v28 }
  0x9f   :  { %v186_v32 = vsel %vm185_vm5, %v1299_v24, %v182_v30 }
  0xa0   :  { %v191_v33 = vsel %vm188_vm6, %v190_v31, %v186_v32 }
  0xa1   :  { %v192_v34 = vmul.f32 %v191_v33, %v1512_v0 }
  0xa3   :  { %1252 = vmatmul.msk.f32.vlgmr.msra.gmra.mxu0 %vm49_vm0, %v192_v34 }
 0x120   :  { %v347_v36 = vpop.f32.mrf.mxu0 }
 0x121   :  { %v348_v38 = vadd.f32 %v1579_v35, %v347_v36 }
 0x123   :  { %v402_v39 = vadd.f32 %v399_v37, %v348_v38 }
 0x125   :  { %1300 = vtanh.f32 %v402_v39  ;;  %v1260_v41 = vmul.f32 -1.442695, %v402_v39 }
 0x127   :  { %1302 = vpow2.f32 %v1260_v41 }
 0x12b   :  { %v1301_v40 = vpop.eup %1300 }
 0x12c   :  { %425 = vrot.lane.b32.xlu0 %v1301_v40, %s1456_s27 }
 0x12d   :  { %v1303_v42 = vpop.eup %1302 }
 0x12e   :  { %v406_v43 = vadd.f32 1.0, %v1303_v42 }
 0x130   :  { %1304 = vrcp.f32 %v406_v43  ;;  %v418_v49 = vand.u32 2147483648, %v406_v43  ;;  %vm412_vm8 = vweird.f32 %v406_v43  ;;  %v416_v50 = vand.u32 2147483647, %v406_v43 }
 0x132   :  { %v419_v52 = vor.u32 1.1754944e-38, %v418_v49  ;;  %vm417_vm10 = vcmp.eq.f32.partialorder %v416_v50, 8.507059e+37 }
 0x136   :  { %v1305_v44 = vpop.eup %1304 }
 0x137   :  { %v408_v45 = vmul.f32 %v1305_v44, %v406_v43  ;;  %vm413_vm7 = vweird.f32 %v1305_v44 }
 0x138   :  { %vm414_vm9 = vmor %vm412_vm8, %vm413_vm7 }
 0x139   :  { %v409_v46 = vsub.f32 1.0, %v408_v45 }
 0x13b   :  { %v410_v47 = vmul.f32 %v1305_v44, %v409_v46 }
 0x13d   :  { %v411_v48 = vadd.f32 %v1305_v44, %v410_v47 }
 0x13f   :  { %v415_v51 = vsel %vm414_vm9, %v1305_v44, %v411_v48 }
 0x140   :  { %v420_v54 = vsel %vm417_vm10, %v419_v52, %v415_v51  ;;  %v1605_v51 = vld [vmem:[%s1787_s0 + $0x30] sm:$0xff] }
 0x141   :  { %v423_v59 = vmul.f32 0.0, %v420_v54  ;;  %v47_v52 = vmul.f32 %v1605_v51, %v1605_v51 }
 0x19e   :  { %v426_v53 = vpop.permute.xlu0 %425 }
 0x19f   :  { %v428_v55 = vmul.f32 %v426_v53, %v420_v54  ;;  %v1612_v53 = vld [vmem:[%s1787_s0 + $0x38] sm:$0xff] }
 0x1a1   :  { %430 = vrot.lane.b32.xlu1 %v428_v55, %s1457_s28  ;;  %v48_v55 = vmul.f32 %v1612_v53, %v1612_v53 }
 0x213   :  { %v431_v60 = vpop.permute.xlu1 %430 }
 0x214   :  { %v1588_v61 = vadd.f32 %v431_v60, %v423_v59 }
 0x216   :  { %1306 = vtanh.f32 %v1588_v61 }
 0x217   :  { %1308 = vrsqrt.f32 %v55_v63 }
 0x21c   :  { %v1307_v62 = vpop.eup %1306 }
 0x21d   :  { %436 = vrot.lane.b32.xlu1 %v1307_v62, %s1456_s27  ;;  %v1309_v0 = vpop.eup %1308  ;;  %v1626_v62 = vld [vmem:[%s1787_s0 + $0x10] sm:$0xff] }
 0x21e   :  { %v87_v1 = vmul.f32 %v1309_v0, %v55_v63 }
 0x220   :  { %v88_v2 = vmul.f32 %v1309_v0, %v87_v1 }
 0x222   :  { %v89_v3 = vmul.f32 0.5, %v88_v2 }
 0x224   :  { %v90_v4 = vsub.f32 1.5, %v89_v3 }
 0x226   :  { %v91_v7 = vmul.f32 %v1309_v0, %v90_v4 }
 0x228   :  { %v92_v10 = vmul.f32 %v91_v7, %v55_v63 }
 0x22a   :  { %v94_v11 = vsel %vm93_vm11, %v55_v63, %v92_v10  ;;  %v43_v63 = vmul.f32 %v1626_v62, %v1626_v62 }
 0x22b   :  { %v97_v12 = vsel %vm95_vm12, %v96_v9, %v94_v11 }
 0x22c   :  { %v171_v13 = vmax.f32 %v97_v12, 1e-12  ;;  %v56_v0 = vsel %vm49_vm0, %v43_v63, 0.0 }
 0x22e   :  { %1310 = vrcp.f32 %v171_v13  ;;  %v204_v20 = vand.u32 2147483648, %v171_v13  ;;  %vm198_vm13 = vweird.f32 %v171_v13  ;;  %v202_v22 = vand.u32 2147483647, %v171_v13 }
 0x230   :  { %v205_v24 = vor.u32 1.1754944e-38, %v204_v20  ;;  %vm203_vm1 = vcmp.eq.f32.partialorder %v202_v22, 8.507059e+37 }
 0x234   :  { %v1311_v18 = vpop.eup %1310 }
 0x235   :  { %v194_v19 = vmul.f32 %v1311_v18, %v171_v13  ;;  %vm199_vm14 = vweird.f32 %v1311_v18 }
 0x236   :  { %vm200_vm15 = vmor %vm198_vm13, %vm199_vm14 }
 0x237   :  { %v195_v21 = vsub.f32 1.0, %v194_v19 }
 0x239   :  { %v196_v23 = vmul.f32 %v1311_v18, %v195_v21 }
 0x23b   :  { %v197_v25 = vadd.f32 %v1311_v18, %v196_v23 }
 0x23d   :  { %v201_v26 = vsel %vm200_vm15, %v1311_v18, %v197_v25 }
 0x23e   :  { %v206_v27 = vsel %vm203_vm1, %v205_v24, %v201_v26 }
 0x23f   :  { %v207_v28 = vmul.f32 %v206_v27, %v34_v56  ;;  %v71_v56 = vsel %vm49_vm0, %v48_v55, 0.0 }
 0x241   :  { %1253 = vmatmul.msk.f32.gmra.mxu0 %vm49_vm0, %v207_v28 }
 0x28f   :  { %v437_v15 = vpop.permute.xlu1 %436 }
 0x290   :  { %v439_v17 = vmul.f32 %v437_v15, %v420_v54  ;;  %v68_v54 = vsel %vm49_vm0, %v47_v52, 0.0 }
 0x291   :  { %69 = vadd.xlane.f32.xlu0 %v68_v54 }
 0x292   :  { %441 = vrot.lane.b32.xlu2 %v439_v17, %s1457_s28 }
 0x2be   :  { %v350_v30 = vpop.f32.mrf.mxu0 }
 0x2bf   :  { %v351_v31 = vadd.f32 %v1579_v35, %v350_v30 }
 0x2ec   :  { %v442_v29 = vpop.permute.xlu2 %441 }
 0x2ed   :  { %1261 = vmatmul.msk.f32.vlgmr.msra.gmra.mxu2 %vm49_vm0, %v442_v29 }
 0x2ee   :  { %835 = vmatpush.msra.mxu2 %v1526_v5 }
 0x2f0   :  { %836 = vmatpush.msra.mxu2 %v1532_v6 }
 0x2f2   :  { %837 = vmatpush.msra.mxu2 %v1540_v8 }
 0x2f4   :  { %838 = vmatpush.msra.mxu2 %v1556_v14 }
 0x370   :  { %v462_v32 = vpop.f32.mrf.mxu2 }
 0x371   :  { %v465_v33 = vadd.f32 %v462_v32, %v351_v31 }
 0x373   :  { %1312 = vtanh.f32 %v465_v33  ;;  %v1262_v36 = vmul.f32 -1.442695, %v465_v33 }
 0x375   :  { %1314 = vpow2.f32 %v1262_v36 }
 0x379   :  { %v1313_v34 = vpop.eup %1312 }
 0x37a   :  { %488 = vrot.lane.b32.xlu1 %v1313_v34, %s1456_s27 }
 0x37b   :  { %v1315_v37 = vpop.eup %1314 }
 0x37c   :  { %v469_v38 = vadd.f32 1.0, %v1315_v37 }
 0x37e   :  { %1316 = vrcp.f32 %v469_v38  ;;  %v481_v44 = vand.u32 2147483648, %v469_v38  ;;  %vm475_vm3 = vweird.f32 %v469_v38  ;;  %v479_v45 = vand.u32 2147483647, %v469_v38 }
 0x380   :  { %v482_v47 = vor.u32 1.1754944e-38, %v481_v44  ;;  %vm480_vm5 = vcmp.eq.f32.partialorder %v479_v45, 8.507059e+37 }
 0x384   :  { %v1317_v39 = vpop.eup %1316 }
 0x385   :  { %v471_v40 = vmul.f32 %v1317_v39, %v469_v38  ;;  %vm476_vm2 = vweird.f32 %v1317_v39 }
 0x386   :  { %vm477_vm4 = vmor %vm475_vm3, %vm476_vm2 }
 0x387   :  { %v472_v41 = vsub.f32 1.0, %v471_v40 }
 0x389   :  { %v473_v42 = vmul.f32 %v1317_v39, %v472_v41 }
 0x38b   :  { %v474_v43 = vadd.f32 %v1317_v39, %v473_v42 }
 0x38d   :  { %v478_v46 = vsel %vm477_vm4, %v1317_v39, %v474_v43 }
 0x38e   :  { %v483_v49 = vsel %vm480_vm5, %v482_v47, %v478_v46 }
 0x38f   :  { %v486_v57 = vmul.f32 %v483_v49, %v1588_v61  ;;  %v70_v61 = vpop.xlane.xlu0 %69 }
 0x390   :  { %vm153_vm6 = vcmp.eq.f32.partialorder %v70_v61, inf  ;;  %v156_v20 = vand.u32 2147483648, %v70_v61  ;;  %vm155_vm7 = vcmp.eq.f32.partialorder %v70_v61, 0.0 }
 0x3ec   :  { %v489_v48 = vpop.permute.xlu1 %488 }
 0x3ed   :  { %v491_v50 = vmul.f32 %v489_v48, %v483_v49 }
 0x3ef   :  { %493 = vrot.lane.b32.xlu1 %v491_v50, %s1457_s28 }
 0x419   :  { %72 = vadd.xlane.f32.xlu1 %v71_v56 }
 0x461   :  { %v494_v58 = vpop.permute.xlu1 %493 }
 0x462   :  { %v1619_v59 = vadd.f32 %v494_v58, %v486_v57 }
 0x464   :  { %1318 = vtanh.f32 %v1619_v59 }
 0x465   :  { %1320 = vrsqrt.f32 %v70_v61 }
 0x46a   :  { %v1319_v60 = vpop.eup %1318 }
 0x46b   :  { %499 = vrot.lane.b32.xlu2 %v1319_v60, %s1456_s27  ;;  %v1321_v4 = vpop.eup %1320 }
 0x46c   :  { %v147_v7 = vmul.f32 %v1321_v4, %v70_v61 }
 0x46e   :  { %v148_v10 = vmul.f32 %v1321_v4, %v147_v7 }
 0x470   :  { %v149_v12 = vmul.f32 0.5, %v148_v10 }
 0x472   :  { %v150_v15 = vsub.f32 1.5, %v149_v12 }
 0x474   :  { %v151_v18 = vmul.f32 %v1321_v4, %v150_v15 }
 0x476   :  { %v152_v21 = vmul.f32 %v151_v18, %v70_v61 }
 0x478   :  { %v154_v24 = vsel %vm153_vm6, %v70_v61, %v152_v21 }
 0x479   :  { %v157_v26 = vsel %vm155_vm7, %v156_v20, %v154_v24 }
 0x47a   :  { %v176_v27 = vmax.f32 %v157_v26, 1e-12 }
 0x47c   :  { %v279_v37 = vand.u32 2147483648, %v176_v27  ;;  %vm273_vm10 = vweird.f32 %v176_v27  ;;  %v277_v39 = vand.u32 2147483647, %v176_v27 }
 0x47e   :  { %v280_v40 = vor.u32 1.1754944e-38, %v279_v37  ;;  %vm278_vm13 = vcmp.eq.f32.partialorder %v277_v39, 8.507059e+37  ;;  %v36_v39 = vld [vmem:[%s1787_s0 + $0x18] sm:$0xff] }
 0x48c   :  { %v73_v1 = vpop.xlane.xlu1 %72 }
 0x48d   :  { %1322 = vrsqrt.f32 %v73_v1  ;;  %vm165_vm8 = vcmp.eq.f32.partialorder %v73_v1, inf  ;;  %v168_v23 = vand.u32 2147483648, %v73_v1  ;;  %vm167_vm9 = vcmp.eq.f32.partialorder %v73_v1, 0.0 }
 0x48e   :  { %1324 = vrcp.f32 %v176_v27 }
 0x493   :  { %v1323_v9 = vpop.eup %1322 }
 0x494   :  { %57 = vadd.xlane.f32.xlu2 %v56_v0  ;;  %v159_v11 = vmul.f32 %v1323_v9, %v73_v1  ;;  %v1325_v31 = vpop.eup %1324 }
 0x495   :  { %v269_v32 = vmul.f32 %v1325_v31, %v176_v27  ;;  %vm274_vm11 = vweird.f32 %v1325_v31 }
 0x496   :  { %v160_v13 = vmul.f32 %v1323_v9, %v159_v11  ;;  %vm275_vm12 = vmor %vm273_vm10, %vm274_vm11 }
 0x497   :  { %v270_v33 = vsub.f32 1.0, %v269_v32 }
 0x498   :  { %v161_v17 = vmul.f32 0.5, %v160_v13 }
 0x499   :  { %v271_v34 = vmul.f32 %v1325_v31, %v270_v33 }
 0x49a   :  { %v162_v19 = vsub.f32 1.5, %v161_v17 }
 0x49b   :  { %v272_v38 = vadd.f32 %v1325_v31, %v271_v34 }
 0x49c   :  { %v163_v22 = vmul.f32 %v1323_v9, %v162_v19 }
 0x49d   :  { %v276_v41 = vsel %vm275_vm12, %v1325_v31, %v272_v38 }
 0x49e   :  { %v164_v25 = vmul.f32 %v163_v22, %v73_v1  ;;  %v281_v43 = vsel %vm278_vm13, %v280_v40, %v276_v41  ;;  %v44_v40 = vmul.f32 %v36_v39, %v36_v39 }
 0x49f   :  { %v282_v44 = vmul.f32 %v281_v43, %v1605_v51 }
 0x4a0   :  { %v166_v28 = vsel %vm165_vm8, %v73_v1, %v164_v25  ;;  %v59_v41 = vsel %vm49_vm0, %v44_v40, 0.0 }
 0x4a1   :  { %v169_v29 = vsel %vm167_vm9, %v168_v23, %v166_v28  ;;  %1258 = vmatmul.msk.f32.vlgmr.msra.gmra.mxu3 %vm49_vm0, %v282_v44 }
 0x4a2   :  { %v177_v30 = vmax.f32 %v169_v29, 1e-12  ;;  %709 = vmatpush.msra.mxu3 %v1526_v5 }
 0x4a4   :  { %1326 = vrcp.f32 %v177_v30  ;;  %v294_v47 = vand.u32 2147483648, %v177_v30  ;;  %vm288_vm14 = vweird.f32 %v177_v30  ;;  %710 = vmatpush.msra.mxu3 %v1532_v6 }
 0x4a6   :  { %v295_v50 = vor.u32 1.1754944e-38, %v294_v47  ;;  %711 = vmatpush.msra.mxu3 %v1540_v8 }
 0x4a8   :  { %712 = vmatpush.msra.mxu3 %v1556_v14 }
 0x4aa   :  { %v1327_v36 = vpop.eup %1326 }
 0x4ab   :  { %v284_v42 = vmul.f32 %v1327_v36, %v177_v30  ;;  %vm289_vm15 = vweird.f32 %v1327_v36 }
 0x4ac   :  { %vm290_vm1 = vmor %vm288_vm14, %vm289_vm15 }
 0x4ad   :  { %v285_v45 = vsub.f32 1.0, %v284_v42 }
 0x4af   :  { %v286_v46 = vmul.f32 %v1327_v36, %v285_v45 }
 0x4b1   :  { %v287_v48 = vadd.f32 %v1327_v36, %v286_v46 }
 0x4b3   :  { %v291_v52 = vsel %vm290_vm1, %v1327_v36, %v287_v48 }
 0x4c5   :  { %v500_v2 = vpop.permute.xlu2 %499 }
 0x4c6   :  { %v502_v3 = vmul.f32 %v500_v2, %v483_v49  ;;  %v292_v49 = vand.u32 2147483647, %v177_v30 }
 0x4c8   :  { %504 = vrot.lane.b32.xlu0 %v502_v3, %s1457_s28  ;;  %vm293_vm2 = vcmp.eq.f32.partialorder %v292_v49, 8.507059e+37 }
 0x4c9   :  { %v296_v54 = vsel %vm293_vm2, %v295_v50, %v291_v52 }
 0x4ca   :  { %v297_v51 = vmul.f32 %v296_v54, %v1612_v53 }
 0x4cc   :  { %1259 = vmatmul.msk.f32.gmra.mxu3 %vm49_vm0, %v297_v51 }
 0x4f2   :  { %60 = vadd.xlane.f32.xlu0 %v59_v41 }
 0x507   :  { %v58_v5 = vpop.xlane.xlu2 %57 }
 0x508   :  { %1328 = vrsqrt.f32 %v58_v5  ;;  %vm105_vm3 = vcmp.eq.f32.partialorder %v58_v5, inf  ;;  %v108_v0 = vand.u32 2147483648, %v58_v5  ;;  %vm107_vm4 = vcmp.eq.f32.partialorder %v58_v5, 0.0 }
 0x50e   :  { %v1329_v55 = vpop.eup %1328 }
 0x50f   :  { %v99_v56 = vmul.f32 %v1329_v55, %v58_v5 }
 0x511   :  { %v100_v57 = vmul.f32 %v1329_v55, %v99_v56 }
 0x513   :  { %v101_v58 = vmul.f32 0.5, %v100_v57 }
 0x515   :  { %v102_v60 = vsub.f32 1.5, %v101_v58 }
 0x517   :  { %v103_v63 = vmul.f32 %v1329_v55, %v102_v60 }
 0x519   :  { %v104_v6 = vmul.f32 %v103_v63, %v58_v5 }
 0x51b   :  { %v106_v61 = vsel %vm105_vm3, %v58_v5, %v104_v6 }
 0x51c   :  { %v109_v8 = vsel %vm107_vm4, %v108_v0, %v106_v61 }
 0x51d   :  { %v172_v1 = vmax.f32 %v109_v8, 1e-12 }
 0x51f   :  { %1330 = vrcp.f32 %v172_v1  ;;  %v219_v3 = vand.u32 2147483648, %v172_v1  ;;  %v217_v7 = vand.u32 2147483647, %v172_v1  ;;  %vm213_vm6 = vweird.f32 %v172_v1 }
 0x521   :  { %v220_v10 = vor.u32 1.1754944e-38, %v219_v3  ;;  %vm218_vm8 = vcmp.eq.f32.partialorder %v217_v7, 8.507059e+37 }
 0x524   :  { %v1643_v17 = vpop.f32.mrf.mxu3 }
 0x525   :  { %v1331_v53 = vpop.eup %1330 }
 0x526   :  { %v209_v14 = vmul.f32 %v1331_v53, %v172_v1  ;;  %vm214_vm5 = vweird.f32 %v1331_v53 }
 0x527   :  { %vm215_vm7 = vmor %vm213_vm6, %vm214_vm5 }
 0x528   :  { %v210_v2 = vsub.f32 1.0, %v209_v14 }
 0x52a   :  { %v211_v4 = vmul.f32 %v1331_v53, %v210_v2 }
 0x52c   :  { %v212_v9 = vadd.f32 %v1331_v53, %v211_v4 }
 0x52e   :  { %v216_v11 = vsel %vm215_vm7, %v1331_v53, %v212_v9 }
 0x52f   :  { %v221_v12 = vsel %vm218_vm8, %v220_v10, %v216_v11 }
 0x530   :  { %v222_v13 = vmul.f32 %v221_v12, %v1626_v62 }
 0x532   :  { %1254 = vmatmul.msk.f32.gmra.mxu0 %vm49_vm0, %v222_v13 }
 0x53a   :  { %v505_v15 = vpop.permute.xlu0 %504 }
 0x53b   :  { %1263 = vmatmul.msk.f32.vlgmr.msrb.gmra.mxu3 %vm49_vm0, %v505_v15 }
 0x54f   :  { %v1645_v18 = vpop.f32.mrf.mxu3 }
 0x565   :  { %v61_v46 = vpop.xlane.xlu0 %60 }
 0x566   :  { %vm117_vm13 = vcmp.eq.f32.partialorder %v61_v46, inf  ;;  %v120_v51 = vand.u32 2147483648, %v61_v46  ;;  %vm119_vm14 = vcmp.eq.f32.partialorder %v61_v46, 0.0 }
 0x5af   :  { %v353_v19 = vpop.f32.mrf.mxu0 }
 0x5b0   :  { %v354_v20 = vadd.f32 %v1579_v35, %v353_v19 }
 0x5be   :  { %v525_v21 = vpop.f32.mrf.mxu3 }
 0x5bf   :  { %v528_v22 = vadd.f32 %v525_v21, %v354_v20 }
 0x5c1   :  { %1332 = vtanh.f32 %v528_v22  ;;  %v1264_v24 = vmul.f32 -1.442695, %v528_v22 }
 0x5c3   :  { %1334 = vpow2.f32 %v1264_v24 }
 0x5c7   :  { %v1333_v23 = vpop.eup %1332 }
 0x5c8   :  { %551 = vrot.lane.b32.xlu1 %v1333_v23, %s1456_s27 }
 0x5c9   :  { %v1335_v62 = vpop.eup %1334 }
 0x5ca   :  { %v532_v25 = vadd.f32 1.0, %v1335_v62 }
 0x5cc   :  { %1336 = vrcp.f32 %v532_v25  ;;  %v544_v31 = vand.u32 2147483648, %v532_v25  ;;  %vm538_vm10 = vweird.f32 %v532_v25  ;;  %v542_v32 = vand.u32 2147483647, %v532_v25 }
 0x5ce   :  { %v545_v34 = vor.u32 1.1754944e-38, %v544_v31  ;;  %vm543_vm12 = vcmp.eq.f32.partialorder %v542_v32, 8.507059e+37  ;;  %v37_v31 = vld [vmem:[%s1787_s0 + $0x20] sm:$0xff] }
 0x5cf   :  { %v45_v32 = vmul.f32 %v37_v31, %v37_v31 }
 0x5d2   :  { %v1337_v26 = vpop.eup %1336 }
 0x5d3   :  { %v534_v27 = vmul.f32 %v1337_v26, %v532_v25  ;;  %vm539_vm9 = vweird.f32 %v1337_v26 }
 0x5d4   :  { %vm540_vm11 = vmor %vm538_vm10, %vm539_vm9 }
 0x5d5   :  { %v535_v28 = vsub.f32 1.0, %v534_v27 }
 0x5d7   :  { %v536_v29 = vmul.f32 %v1337_v26, %v535_v28 }
 0x5d9   :  { %v537_v30 = vadd.f32 %v1337_v26, %v536_v29 }
 0x5db   :  { %v541_v33 = vsel %vm540_vm11, %v1337_v26, %v537_v30 }
 0x5dc   :  { %v546_v37 = vsel %vm543_vm12, %v545_v34, %v541_v33  ;;  %v62_v33 = vsel %vm49_vm0, %v45_v32, 0.0 }
 0x5dd   :  { %v549_v42 = vmul.f32 %v546_v37, %v1619_v59 }
 0x63a   :  { %v552_v36 = vpop.permute.xlu1 %551 }
 0x63b   :  { %v554_v38 = vmul.f32 %v552_v36, %v546_v37 }
 0x63d   :  { %556 = vrot.lane.b32.xlu2 %v554_v38, %s1457_s28 }
 0x697   :  { %v557_v43 = vpop.permute.xlu2 %556 }
 0x698   :  { %v1655_v44 = vadd.f32 %v557_v43, %v549_v42 }
 0x69a   :  { %1338 = vtanh.f32 %v1655_v44 }
 0x69b   :  { %1340 = vrsqrt.f32 %v61_v46 }
 0x6a0   :  { %v1339_v45 = vpop.eup %1338 }
 0x6a1   :  { %562 = vrot.lane.b32.xlu1 %v1339_v45, %s1456_s27  ;;  %v1341_v47 = vpop.eup %1340 }
 0x6a2   :  { %v111_v48 = vmul.f32 %v1341_v47, %v61_v46 }
 0x6a4   :  { %v112_v49 = vmul.f32 %v1341_v47, %v111_v48 }
 0x6a6   :  { %v113_v50 = vmul.f32 0.5, %v112_v49 }
 0x6a8   :  { %v114_v52 = vsub.f32 1.5, %v113_v50 }
 0x6aa   :  { %v115_v54 = vmul.f32 %v1341_v47, %v114_v52 }
 0x6ac   :  { %v116_v5 = vmul.f32 %v115_v54, %v61_v46 }
 0x6ae   :  { %v118_v59 = vsel %vm117_vm13, %v61_v46, %v116_v5 }
 0x6af   :  { %v121_v55 = vsel %vm119_vm14, %v120_v51, %v118_v59 }
 0x6b0   :  { %v173_v56 = vmax.f32 %v121_v55, 1e-12 }
 0x6b2   :  { %1342 = vrcp.f32 %v173_v56  ;;  %v234_v6 = vand.u32 2147483648, %v173_v56  ;;  %vm228_vm15 = vweird.f32 %v173_v56  ;;  %v232_v61 = vand.u32 2147483647, %v173_v56 }
 0x6b4   :  { %v235_v1 = vor.u32 1.1754944e-38, %v234_v6  ;;  %vm233_vm3 = vcmp.eq.f32.partialorder %v232_v61, 8.507059e+37 }
 0x6b8   :  { %v1343_v60 = vpop.eup %1342 }
 0x6b9   :  { %v224_v63 = vmul.f32 %v1343_v60, %v173_v56  ;;  %vm229_vm1 = vweird.f32 %v1343_v60 }
 0x6ba   :  { %vm230_vm2 = vmor %vm228_vm15, %vm229_vm1 }
 0x6bb   :  { %v225_v0 = vsub.f32 1.0, %v224_v63 }
 0x6bd   :  { %v226_v8 = vmul.f32 %v1343_v60, %v225_v0 }
 0x6bf   :  { %v227_v53 = vadd.f32 %v1343_v60, %v226_v8 }
 0x6c1   :  { %v231_v14 = vsel %vm230_vm2, %v1343_v60, %v227_v53 }
 0x6c2   :  { %v236_v2 = vsel %vm233_vm3, %v235_v1, %v231_v14 }
 0x6c3   :  { %v237_v3 = vmul.f32 %v236_v2, %v36_v39 }
 0x6c5   :  { %1255 = vmatmul.msk.f32.gmra.mxu0 %vm49_vm0, %v237_v3 }
 0x713   :  { %v563_v57 = vpop.permute.xlu1 %562 }
 0x714   :  { %v565_v58 = vmul.f32 %v563_v57, %v546_v37 }
 0x716   :  { %567 = vrot.lane.b32.xlu2 %v565_v58, %s1457_s28 }
 0x742   :  { %v356_v7 = vpop.f32.mrf.mxu0 }
 0x743   :  { %v357_v9 = vadd.f32 %v1579_v35, %v356_v7 }
 0x770   :  { %v568_v4 = vpop.permute.xlu2 %567 }
 0x771   :  { %1265 = vmatmul.msk.f32.vlgmr.msrb.gmra.mxu1 %vm49_vm0, %v568_v4 }
 0x7ee   :  { %v588_v10 = vpop.f32.mrf.mxu1 }
 0x7ef   :  { %v591_v11 = vadd.f32 %v588_v10, %v357_v9 }
 0x7f1   :  { %1344 = vtanh.f32 %v591_v11  ;;  %v1266_v13 = vmul.f32 -1.442695, %v591_v11 }
 0x7f3   :  { %1346 = vpow2.f32 %v1266_v13 }
 0x7f7   :  { %v1345_v12 = vpop.eup %1344 }
 0x7f8   :  { %614 = vrot.lane.b32.xlu1 %v1345_v12, %s1456_s27 }
 0x7f9   :  { %v1347_v15 = vpop.eup %1346 }
 0x7fa   :  { %v595_v19 = vadd.f32 1.0, %v1347_v15 }
 0x7fc   :  { %1348 = vrcp.f32 %v595_v19  ;;  %v607_v62 = vand.u32 2147483648, %v595_v19  ;;  %vm601_vm5 = vweird.f32 %v595_v19  ;;  %v605_v25 = vand.u32 2147483647, %v595_v19 }
 0x7fe   :  { %v608_v27 = vor.u32 1.1754944e-38, %v607_v62  ;;  %vm606_vm7 = vcmp.eq.f32.partialorder %v605_v25, 8.507059e+37 }
 0x802   :  { %v1349_v20 = vpop.eup %1348 }
 0x803   :  { %v597_v21 = vmul.f32 %v1349_v20, %v595_v19  ;;  %vm602_vm4 = vweird.f32 %v1349_v20 }
 0x804   :  { %vm603_vm6 = vmor %vm601_vm5, %vm602_vm4 }
 0x805   :  { %v598_v22 = vsub.f32 1.0, %v597_v21 }
 0x807   :  { %v599_v23 = vmul.f32 %v1349_v20, %v598_v22 }
 0x809   :  { %v600_v24 = vadd.f32 %v1349_v20, %v599_v23 }
 0x80b   :  { %v604_v26 = vsel %vm603_vm6, %v1349_v20, %v600_v24 }
 0x80c   :  { %v609_v29 = vsel %vm606_vm7, %v608_v27, %v604_v26 }
 0x80d   :  { %v612_v34 = vmul.f32 %v609_v29, %v1655_v44 }
 0x86a   :  { %v615_v28 = vpop.permute.xlu1 %614 }
 0x86b   :  { %v617_v30 = vmul.f32 %v615_v28, %v609_v29  ;;  %v38_v28 = vld [vmem:[%s1787_s0 + $0x28] sm:$0xff] }
 0x86d   :  { %619 = vrot.lane.b32.xlu2 %v617_v30, %s1457_s28 }
 0x896   :  { %63 = vadd.xlane.f32.xlu2 %v62_v33 }
 0x8c7   :  { %v620_v36 = vpop.permute.xlu2 %619 }
 0x8c8   :  { %v1670_v37 = vadd.f32 %v620_v36, %v612_v34 }
 0x8ca   :  { %1350 = vtanh.f32 %v1670_v37 }
 0x8d0   :  { %v1351_v38 = vpop.eup %1350 }
 0x8d1   :  { %625 = vrot.lane.b32.xlu1 %v1351_v38, %s1456_s27 }
 0x909   :  { %v64_v39 = vpop.xlane.xlu2 %63 }
 0x90a   :  { %1352 = vrsqrt.f32 %v64_v39  ;;  %vm129_vm8 = vcmp.eq.f32.partialorder %v64_v39, inf  ;;  %v132_v47 = vand.u32 2147483648, %v64_v39  ;;  %vm131_vm9 = vcmp.eq.f32.partialorder %v64_v39, 0.0 }
 0x910   :  { %v1353_v40 = vpop.eup %1352 }
 0x911   :  { %v123_v41 = vmul.f32 %v1353_v40, %v64_v39 }
 0x913   :  { %v124_v42 = vmul.f32 %v1353_v40, %v123_v41 }
 0x915   :  { %v125_v43 = vmul.f32 0.5, %v124_v42 }
 0x917   :  { %v126_v45 = vsub.f32 1.5, %v125_v43 }
 0x919   :  { %v127_v46 = vmul.f32 %v1353_v40, %v126_v45 }
 0x91b   :  { %v128_v48 = vmul.f32 %v127_v46, %v64_v39 }
 0x91d   :  { %v130_v44 = vsel %vm129_vm8, %v64_v39, %v128_v48 }
 0x91e   :  { %v133_v49 = vsel %vm131_vm9, %v132_v47, %v130_v44 }
 0x91f   :  { %v174_v50 = vmax.f32 %v133_v49, 1e-12 }
 0x921   :  { %1354 = vrcp.f32 %v174_v50  ;;  %v249_v59 = vand.u32 2147483648, %v174_v50  ;;  %vm243_vm10 = vweird.f32 %v174_v50  ;;  %v247_v56 = vand.u32 2147483647, %v174_v50 }
 0x923   :  { %v250_v58 = vor.u32 1.1754944e-38, %v249_v59  ;;  %vm248_vm13 = vcmp.eq.f32.partialorder %v247_v56, 8.507059e+37 }
 0x927   :  { %v1355_v51 = vpop.eup %1354 }
 0x928   :  { %v239_v5 = vmul.f32 %v1355_v51, %v174_v50  ;;  %vm244_vm11 = vweird.f32 %v1355_v51 }
 0x929   :  { %vm245_vm12 = vmor %vm243_vm10, %vm244_vm11 }
 0x92a   :  { %v240_v55 = vsub.f32 1.0, %v239_v5 }
 0x92c   :  { %v241_v57 = vmul.f32 %v1355_v51, %v240_v55 }
 0x92e   :  { %v242_v60 = vadd.f32 %v1355_v51, %v241_v57 }
 0x930   :  { %v246_v63 = vsel %vm245_vm12, %v1355_v51, %v242_v60 }
 0x931   :  { %v251_v6 = vsel %vm248_vm13, %v250_v58, %v246_v63 }
 0x932   :  { %v252_v0 = vmul.f32 %v251_v6, %v37_v31 }
 0x934   :  { %1256 = vmatmul.msk.f32.gmra.mxu0 %vm49_vm0, %v252_v0 }
 0x943   :  { %v626_v52 = vpop.permute.xlu1 %625 }
 0x944   :  { %v628_v54 = vmul.f32 %v626_v52, %v609_v29  ;;  %v46_v29 = vmul.f32 %v38_v28, %v38_v28 }
 0x946   :  { %630 = vrot.lane.b32.xlu1 %v628_v54, %s1457_s28  ;;  %v65_v30 = vsel %vm49_vm0, %v46_v29, 0.0 }
 0x9b1   :  { %v359_v8 = vpop.f32.mrf.mxu0 }
 0x9b2   :  { %v360_v1 = vadd.f32 %v1579_v35, %v359_v8 }
 0x9b8   :  { %v631_v61 = vpop.permute.xlu1 %630 }
 0x9b9   :  { %1267 = vmatmul.msk.f32.vlgmr.msrb.gmra.mxu2 %vm49_vm0, %v631_v61 }
 0xa3c   :  { %v651_v53 = vpop.f32.mrf.mxu2 }
 0xa3d   :  { %v654_v14 = vadd.f32 %v651_v53, %v360_v1 }
 0xa3f   :  { %1356 = vtanh.f32 %v654_v14  ;;  %v1268_v3 = vmul.f32 -1.442695, %v654_v14 }
 0xa41   :  { %1358 = vpow2.f32 %v1268_v3 }
 0xa45   :  { %v1357_v2 = vpop.eup %1356 }
 0xa46   :  { %677 = vrot.lane.b32.xlu1 %v1357_v2, %s1456_s27 }
 0xa47   :  { %v1359_v4 = vpop.eup %1358 }
 0xa48   :  { %v658_v7 = vadd.f32 1.0, %v1359_v4 }
 0xa4a   :  { %1360 = vrcp.f32 %v658_v7  ;;  %v670_v15 = vand.u32 2147483648, %v658_v7  ;;  %vm664_vm15 = vweird.f32 %v658_v7  ;;  %v668_v19 = vand.u32 2147483647, %v658_v7 }
 0xa4c   :  { %v671_v21 = vor.u32 1.1754944e-38, %v670_v15  ;;  %vm669_vm2 = vcmp.eq.f32.partialorder %v668_v19, 8.507059e+37 }
 0xa50   :  { %v1361_v9 = vpop.eup %1360 }
 0xa51   :  { %v660_v10 = vmul.f32 %v1361_v9, %v658_v7  ;;  %vm665_vm14 = vweird.f32 %v1361_v9 }
 0xa52   :  { %vm666_vm1 = vmor %vm664_vm15, %vm665_vm14 }
 0xa53   :  { %v661_v11 = vsub.f32 1.0, %v660_v10 }
 0xa55   :  { %v662_v12 = vmul.f32 %v1361_v9, %v661_v11 }
 0xa57   :  { %v663_v13 = vadd.f32 %v1361_v9, %v662_v12 }
 0xa59   :  { %v667_v20 = vsel %vm666_vm1, %v1361_v9, %v663_v13 }
 0xa5a   :  { %v672_v23 = vsel %vm669_vm2, %v671_v21, %v667_v20 }
 0xa5b   :  { %v675_v62 = vmul.f32 %v672_v23, %v1670_v37 }
 0xab8   :  { %v678_v22 = vpop.permute.xlu1 %677 }
 0xab9   :  { %v680_v24 = vmul.f32 %v678_v22, %v672_v23 }
 0xabb   :  { %682 = vrot.lane.b32.xlu0 %v680_v24, %s1457_s28 }
 0xb2d   :  { %v683_v25 = vpop.permute.xlu0 %682 }
 0xb2e   :  { %v1681_v26 = vadd.f32 %v683_v25, %v675_v62  ;;  %v366_v62 = vadd.f32 %v1579_v35, %v1643_v17 }
 0xb30   :  { %1362 = vtanh.f32 %v1681_v26 }
 0xb36   :  { %v1363_v27 = vpop.eup %1362 }
 0xb37   :  { %688 = vrot.lane.b32.xlu1 %v1363_v27, %s1456_s27 }
 0xb61   :  { %66 = vadd.xlane.f32.xlu1 %v65_v30 }
 0xba9   :  { %v689_v31 = vpop.permute.xlu1 %688 }
 0xbaa   :  { %v691_v32 = vmul.f32 %v689_v31, %v672_v23 }
 0xbac   :  { %693 = vrot.lane.b32.xlu0 %v691_v32, %s1457_s28 }
 0xbd4   :  { %v67_v33 = vpop.xlane.xlu1 %66 }
 0xbd5   :  { %1364 = vrsqrt.f32 %v67_v33  ;;  %vm141_vm3 = vcmp.eq.f32.partialorder %v67_v33, inf  ;;  %v144_v41 = vand.u32 2147483648, %v67_v33  ;;  %vm143_vm4 = vcmp.eq.f32.partialorder %v67_v33, 0.0 }
 0xbdb   :  { %v1365_v34 = vpop.eup %1364 }
 0xbdc   :  { %v135_v36 = vmul.f32 %v1365_v34, %v67_v33 }
 0xbde   :  { %v136_v37 = vmul.f32 %v1365_v34, %v135_v36 }
 0xbe0   :  { %v137_v38 = vmul.f32 0.5, %v136_v37 }
 0xbe2   :  { %v138_v39 = vsub.f32 1.5, %v137_v38 }
 0xbe4   :  { %v139_v40 = vmul.f32 %v1365_v34, %v138_v39 }
 0xbe6   :  { %v140_v42 = vmul.f32 %v139_v40, %v67_v33 }
 0xbe8   :  { %v142_v43 = vsel %vm141_vm3, %v67_v33, %v140_v42 }
 0xbe9   :  { %v145_v45 = vsel %vm143_vm4, %v144_v41, %v142_v43 }
 0xbea   :  { %v175_v46 = vmax.f32 %v145_v45, 1e-12 }
 0xbec   :  { %1366 = vrcp.f32 %v175_v46  ;;  %v264_v44 = vand.u32 2147483648, %v175_v46  ;;  %vm258_vm5 = vweird.f32 %v175_v46  ;;  %v262_v50 = vand.u32 2147483647, %v175_v46 }
 0xbee   :  { %v265_v54 = vor.u32 1.1754944e-38, %v264_v44  ;;  %vm263_vm8 = vcmp.eq.f32.partialorder %v262_v50, 8.507059e+37 }
 0xbf2   :  { %v1367_v47 = vpop.eup %1366 }
 0xbf3   :  { %v254_v48 = vmul.f32 %v1367_v47, %v175_v46  ;;  %vm259_vm6 = vweird.f32 %v1367_v47 }
 0xbf4   :  { %vm260_vm7 = vmor %vm258_vm5, %vm259_vm6 }
 0xbf5   :  { %v255_v49 = vsub.f32 1.0, %v254_v48 }
 0xbf7   :  { %v256_v52 = vmul.f32 %v1367_v47, %v255_v49  ;;  %v1428_v49 = vld [vmem:[%s1789_s2] ss:$0 sm:$0xff] }
 0xbf8   :  { %v369_v50 = vadd.f32 %v1428_v49, %v1645_v18 }
 0xbf9   :  { %v257_v51 = vadd.f32 %v1367_v47, %v256_v52 }
 0xbfb   :  { %v261_v5 = vsel %vm260_vm7, %v1367_v47, %v257_v51 }
 0xbfc   :  { %v266_v59 = vsel %vm263_vm8, %v265_v54, %v261_v5 }
 0xbfd   :  { %v267_v55 = vmul.f32 %v266_v59, %v38_v28 }
 0xbff   :  { %1257 = vmatmul.msk.f32.gmra.mxu0 %vm49_vm0, %v267_v55 }
 0xc1e   :  { %v694_v56 = vpop.permute.xlu0 %693 }
 0xc1f   :  { %1269 = vmatmul.msk.f32.vlgmr.msra.gmra.mxu3 %vm49_vm0, %v694_v56 }
 0xc7c   :  { %v362_v57 = vpop.f32.mrf.mxu0 }
 0xc7d   :  { %v363_v58 = vadd.f32 %v1579_v35, %v362_v57 }
 0xca2   :  { %v714_v60 = vpop.f32.mrf.mxu3 }
 0xca3   :  { %v717_v63 = vadd.f32 %v714_v60, %v363_v58 }
 0xca5   :  { %1368 = vtanh.f32 %v717_v63  ;;  %v1270_v0 = vmul.f32 -1.442695, %v717_v63 }
 0xca7   :  { %1370 = vpow2.f32 %v1270_v0 }
 0xcab   :  { %v1369_v6 = vpop.eup %1368 }
 0xcac   :  { %740 = vrot.lane.b32.xlu0 %v1369_v6, %s1456_s27 }
 0xcad   :  { %v1371_v61 = vpop.eup %1370 }
 0xcae   :  { %v721_v8 = vadd.f32 1.0, %v1371_v61 }
 0xcb0   :  { %1372 = vrcp.f32 %v721_v8  ;;  %v733_v4 = vand.u32 2147483648, %v721_v8  ;;  %vm727_vm10 = vweird.f32 %v721_v8  ;;  %v731_v7 = vand.u32 2147483647, %v721_v8 }
 0xcb2   :  { %v734_v10 = vor.u32 1.1754944e-38, %v733_v4  ;;  %vm732_vm12 = vcmp.eq.f32.partialorder %v731_v7, 8.507059e+37  ;;  %v884_v7 = vld [vmem:[%s1791_s4 + $0x18] sm:$0xff] }
 0xcb3   :  { %906 = vmatpush.msrb.mxu3 %v884_v7 }
 0xcb6   :  { %v1373_v1 = vpop.eup %1372 }
 0xcb7   :  { %v723_v53 = vmul.f32 %v1373_v1, %v721_v8  ;;  %vm728_vm9 = vweird.f32 %v1373_v1 }
 0xcb8   :  { %vm729_vm11 = vmor %vm727_vm10, %vm728_vm9 }
 0xcb9   :  { %v724_v14 = vsub.f32 1.0, %v723_v53 }
 0xcbb   :  { %v725_v2 = vmul.f32 %v1373_v1, %v724_v14 }
 0xcbd   :  { %v726_v3 = vadd.f32 %v1373_v1, %v725_v2 }
 0xcbf   :  { %v730_v9 = vsel %vm729_vm11, %v1373_v1, %v726_v3 }
 0xcc0   :  { %v735_v12 = vsel %vm732_vm12, %v734_v10, %v730_v9  ;;  %v883_v9 = vld [vmem:[%s1791_s4 + $0x10] sm:$0xff]  ;;  %v882_v10 = vld [vmem:[%s1791_s4 + $0x8] sm:$0xff] }
 0xcc1   :  { %v738_v15 = vmul.f32 %v735_v12, %v1681_v26  ;;  %907 = vmatpush.msrb.mxu3 %v883_v9 }
 0xcc3   :  { %908 = vmatpush.msrb.mxu3 %v882_v10 }
 0xd1e   :  { %v741_v11 = vpop.permute.xlu0 %740 }
 0xd1f   :  { %v743_v13 = vmul.f32 %v741_v11, %v735_v12  ;;  %v881_v11 = vld [vmem:[%s1791_s4] sm:$0xff] }
 0xd20   :  { %909 = vmatpush.msrb.mxu3 %v881_v11 }
 0xd21   :  { %745 = vrot.lane.b32.xlu2 %v743_v13, %s1457_s28 }
 0xd7b   :  { %v746_v19 = vpop.permute.xlu2 %745 }
 0xd7c   :  { %v748_v20 = vadd.f32 %v746_v19, %v738_v15  ;;  %v378_v15 = vld [vmem:[%s1793_s6 + $0x18] sm:$0xff]  ;;  %v377_v19 = vld [vmem:[%s1793_s6 + $0x10] sm:$0xff] }
 0xd7d   :  { %926 = vmatpush.msrb.mxu1 %v378_v15  ;;  %989 = vmatpush.msrb.mxu2 %v378_v15 }
 0xd7e   :  { %1374 = vtanh.f32 %v748_v20  ;;  %1059 = vmatpush.msra.mxu3 %v378_v15 }
 0xd7f   :  { %927 = vmatpush.msrb.mxu1 %v377_v19  ;;  %990 = vmatpush.msrb.mxu2 %v377_v19 }
 0xd80   :  { %1060 = vmatpush.msra.mxu3 %v377_v19 }
 0xd84   :  { %v1375_v21 = vpop.eup %1374 }
 0xd85   :  { %751 = vrot.lane.b32.xlu0 %v1375_v21, %s1456_s27  ;;  %v375_v21 = vld [vmem:[%s1793_s6] sm:$0xff] }
 0xdf7   :  { %v752_v22 = vpop.permute.xlu0 %751 }
 0xdf8   :  { %v754_v23 = vmul.f32 %v752_v22, %v735_v12 }
 0xdfa   :  { %756 = vrot.lane.b32.xlu0 %v754_v23, %s1457_s28  ;;  %v1294_v23 = vld [vmem:[%s1792_s5] ss:$0 sm:$0xff] }
 0xe6c   :  { %v757_v24 = vpop.permute.xlu0 %756 }
 0xe6d   :  { %1271 = vmatmul.msk.f32.vlgmr.msra.gmra.mxu1 %vm49_vm0, %v757_v24 }
 0xeea   :  { %v777_v25 = vpop.f32.mrf.mxu1 }
 0xeeb   :  { %v780_v27 = vadd.f32 %v777_v25, %v366_v62 }
 0xeed   :  { %1376 = vtanh.f32 %v780_v27  ;;  %v1272_v28 = vmul.f32 -1.442695, %v780_v27 }
 0xeef   :  { %1378 = vpow2.f32 %v1272_v28 }
 0xef3   :  { %v1377_v26 = vpop.eup %1376 }
 0xef4   :  { %803 = vrot.lane.b32.xlu0 %v1377_v26, %s1456_s27 }
 0xef5   :  { %v1379_v29 = vpop.eup %1378 }
 0xef6   :  { %v784_v30 = vadd.f32 1.0, %v1379_v29 }
 0xef8   :  { %1380 = vrcp.f32 %v784_v30  ;;  %v796_v37 = vand.u32 2147483648, %v784_v30  ;;  %vm790_vm14 = vweird.f32 %v784_v30  ;;  %v794_v35 = vand.u32 2147483647, %v784_v30 }
 0xefa   :  { %v797_v38 = vor.u32 1.1754944e-38, %v796_v37  ;;  %vm795_vm1 = vcmp.eq.f32.partialorder %v794_v35, 8.507059e+37 }
 0xefe   :  { %v1381_v31 = vpop.eup %1380 }
 0xeff   :  { %v786_v32 = vmul.f32 %v1381_v31, %v784_v30  ;;  %vm791_vm13 = vweird.f32 %v1381_v31 }
 0xf00   :  { %vm792_vm15 = vmor %vm790_vm14, %vm791_vm13 }
 0xf01   :  { %v787_v33 = vsub.f32 1.0, %v786_v32 }
 0xf03   :  { %v788_v34 = vmul.f32 %v1381_v31, %v787_v33 }
 0xf05   :  { %v789_v36 = vadd.f32 %v1381_v31, %v788_v34 }
 0xf07   :  { %v793_v17 = vsel %vm792_vm15, %v1381_v31, %v789_v36 }
 0xf08   :  { %v798_v40 = vsel %vm795_vm1, %v797_v38, %v793_v17 }
 0xf09   :  { %v801_v42 = vmul.f32 %v798_v40, %v748_v20  ;;  %v376_v20 = vld [vmem:[%s1793_s6 + $0x8] sm:$0xff] }
 0xf0a   :  { %928 = vmatpush.msrb.mxu1 %v376_v20  ;;  %991 = vmatpush.msrb.mxu2 %v376_v20 }
 0xf0b   :  { %1061 = vmatpush.msra.mxu3 %v376_v20 }
 0xf0c   :  { %929 = vmatpush.msrb.mxu1 %v375_v21  ;;  %992 = vmatpush.msrb.mxu2 %v375_v21 }
 0xf0d   :  { %930 = vmatmul.f32.vlgmr.msrb.gmra.mxu1 %v1455_v16  ;;  %1062 = vmatpush.msra.mxu3 %v375_v21 }
 0xf0e   :  { %1129 = vmatpush.msra.mxu1 %v378_v15 }
 0xf10   :  { %1130 = vmatpush.msra.mxu1 %v377_v19 }
 0xf12   :  { %1131 = vmatpush.msra.mxu1 %v376_v20 }
 0xf14   :  { %1132 = vmatpush.msra.mxu1 %v375_v21 }
 0xf66   :  { %v804_v39 = vpop.permute.xlu0 %803 }
 0xf67   :  { %v806_v41 = vmul.f32 %v804_v39, %v798_v40 }
 0xf69   :  { %808 = vrot.lane.b32.xlu2 %v806_v41, %s1457_s28 }
 0xf8a   :  { %v931_v62 = vpop.f32.mrf.mxu1 }
 0xfc3   :  { %v809_v43 = vpop.permute.xlu2 %808 }
 0xfc4   :  { %v811_v45 = vadd.f32 %v809_v43, %v801_v42 }
 0xfc6   :  { %1382 = vtanh.f32 %v811_v45 }
 0xfcc   :  { %v1383_v46 = vpop.eup %1382 }
 0xfcd   :  { %814 = vrot.lane.b32.xlu1 %v1383_v46, %s1456_s27 }
0x103f   :  { %v815_v47 = vpop.permute.xlu1 %814 }
0x1040   :  { %v817_v48 = vmul.f32 %v815_v47, %v798_v40 }
0x1042   :  { %819 = vrot.lane.b32.xlu0 %v817_v48, %s1457_s28 }
0x10b4   :  { %v820_v44 = vpop.permute.xlu0 %819 }
0x10b5   :  { %1273 = vmatmul.msk.f32.vlgmr.msra.gmra.mxu2 %vm49_vm0, %v820_v44 }
0x1138   :  { %v840_v52 = vpop.f32.mrf.mxu2 }
0x1139   :  { %v843_v54 = vadd.f32 %v840_v52, %v369_v50 }
0x113b   :  { %1384 = vtanh.f32 %v843_v54  ;;  %v1274_v5 = vmul.f32 -1.442695, %v843_v54 }
0x113d   :  { %1386 = vpow2.f32 %v1274_v5 }
0x1141   :  { %v1385_v51 = vpop.eup %1384 }
0x1142   :  { %866 = vrot.lane.b32.xlu2 %v1385_v51, %s1456_s27 }
0x1143   :  { %v1387_v59 = vpop.eup %1386 }
0x1144   :  { %v847_v55 = vadd.f32 1.0, %v1387_v59 }
0x1146   :  { %1388 = vrcp.f32 %v847_v55  ;;  %v859_v6 = vand.u32 2147483648, %v847_v55  ;;  %vm853_vm3 = vweird.f32 %v847_v55  ;;  %v857_v18 = vand.u32 2147483647, %v847_v55 }
0x1148   :  { %v860_v61 = vor.u32 1.1754944e-38, %v859_v6  ;;  %vm858_vm5 = vcmp.eq.f32.partialorder %v857_v18, 8.507059e+37 }
0x114c   :  { %v1389_v56 = vpop.eup %1388 }
0x114d   :  { %v849_v57 = vmul.f32 %v1389_v56, %v847_v55  ;;  %vm854_vm2 = vweird.f32 %v1389_v56 }
0x114e   :  { %vm855_vm4 = vmor %vm853_vm3, %vm854_vm2 }
0x114f   :  { %v850_v58 = vsub.f32 1.0, %v849_v57 }
0x1151   :  { %v851_v60 = vmul.f32 %v1389_v56, %v850_v58 }
0x1153   :  { %v852_v63 = vadd.f32 %v1389_v56, %v851_v60 }
0x1155   :  { %v856_v0 = vsel %vm855_vm4, %v1389_v56, %v852_v63 }
0x1156   :  { %v861_v1 = vsel %vm858_vm5, %v860_v61, %v856_v0 }
0x1157   :  { %v864_v14 = vmul.f32 %v861_v1, %v811_v45 }
0x119c   :  { %v867_v8 = vpop.permute.xlu2 %866 }
0x119d   :  { %v869_v53 = vmul.f32 %v867_v8, %v861_v1 }
0x119f   :  { %871 = vrot.lane.b32.xlu0 %v869_v53, %s1457_s28 }
0x1211   :  { %v872_v2 = vpop.permute.xlu0 %871 }
0x1212   :  { %v874_v3 = vadd.f32 %v872_v2, %v864_v14 }
0x1214   :  { %1390 = vtanh.f32 %v874_v3 }
0x121a   :  { %v1391_v4 = vpop.eup %1390 }
0x121b   :  { %877 = vrot.lane.b32.xlu2 %v1391_v4, %s1456_s27 }
0x1275   :  { %v878_v12 = vpop.permute.xlu2 %877 }
0x1276   :  { %v880_v13 = vmul.f32 %v878_v12, %v861_v1 }
0x1278   :  { %890 = vrot.lane.b32.xlu0 %v880_v13, %s1457_s28 }
0x12ea   :  { %v891_v22 = vpop.permute.xlu0 %890 }
0x12eb   :  { %1275 = vmatmul.msk.f32.vlgmr.msrb.gmra.mxu3 %vm49_vm0, %v891_v22 }
0x136e   :  { %v911_v24 = vpop.f32.mrf.mxu3 }
0x136f   :  { %v1743_v25 = vadd.f32 %v1294_v23, %v911_v24 }
0x1371   :  { %v934_v27 = vadd.f32 %v931_v62, %v1743_v25 }
0x1373   :  { %1392 = vtanh.f32 %v934_v27  ;;  %v1276_v26 = vmul.f32 -1.442695, %v934_v27 }
0x1375   :  { %1394 = vpow2.f32 %v1276_v26 }
0x1379   :  { %v1393_v16 = vpop.eup %1392 }
0x137a   :  { %957 = vrot.lane.b32.xlu2 %v1393_v16, %s1456_s27 }
0x137b   :  { %v1395_v28 = vpop.eup %1394 }
0x137c   :  { %v938_v29 = vadd.f32 1.0, %v1395_v28 }
0x137e   :  { %1396 = vrcp.f32 %v938_v29  ;;  %v950_v36 = vand.u32 2147483648, %v938_v29  ;;  %vm944_vm7 = vweird.f32 %v938_v29  ;;  %v948_v37 = vand.u32 2147483647, %v938_v29 }
0x1380   :  { %v951_v17 = vor.u32 1.1754944e-38, %v950_v36  ;;  %vm949_vm9 = vcmp.eq.f32.partialorder %v948_v37, 8.507059e+37 }
0x1384   :  { %v1397_v30 = vpop.eup %1396 }
0x1385   :  { %v940_v31 = vmul.f32 %v1397_v30, %v938_v29  ;;  %vm945_vm6 = vweird.f32 %v1397_v30 }
0x1386   :  { %vm946_vm8 = vmor %vm944_vm7, %vm945_vm6 }
0x1387   :  { %v941_v32 = vsub.f32 1.0, %v940_v31 }
0x1389   :  { %v942_v33 = vmul.f32 %v1397_v30, %v941_v32 }
0x138b   :  { %v943_v34 = vadd.f32 %v1397_v30, %v942_v33 }
0x138d   :  { %v947_v35 = vsel %vm946_vm8, %v1397_v30, %v943_v34 }
0x138e   :  { %v952_v39 = vsel %vm949_vm9, %v951_v17, %v947_v35  ;;  %vm1234_vm9 = vcmask 25600  }
0x138f   :  { %v955_v41 = vmul.f32 0.0, %v952_v39 }
0x13d4   :  { %v958_v38 = vpop.permute.xlu2 %957 }
0x13d5   :  { %v960_v40 = vmul.f32 %v958_v38, %v952_v39 }
0x13d7   :  { %962 = vrot.lane.b32.xlu1 %v960_v40, %s1457_s28 }
0x1449   :  { %v963_v42 = vpop.permute.xlu1 %962 }
0x144a   :  { %v965_v43 = vadd.f32 %v963_v42, %v955_v41 }
0x144c   :  { %1398 = vtanh.f32 %v965_v43  ;;  %v1022_v1 = vrot.slane %v965_v43, 6 }
0x1452   :  { %v1399_v45 = vpop.eup %1398 }
0x1453   :  { %968 = vrot.lane.b32.xlu0 %v1399_v45, %s1456_s27 }
0x14c5   :  { %v969_v46 = vpop.permute.xlu0 %968 }
0x14c6   :  { %v971_v47 = vmul.f32 %v969_v46, %v952_v39 }
0x14c8   :  { %973 = vrot.lane.b32.xlu2 %v971_v47, %s1457_s28 }
0x1522   :  { %v974_v48 = vpop.permute.xlu2 %973 }
0x1523   :  { %1277 = vmatmul.msk.f32.vlgmr.msrb.gmra.mxu2 %vm49_vm0, %v974_v48 }
0x15a6   :  { %v994_v44 = vpop.f32.mrf.mxu2 }
0x15a7   :  { %v998_v49 = vrot.slane %v994_v44, 6 }
0x15a9   :  { %v1000_v50 = vadd.f32 %v998_v49, %v1743_v25 }
0x15ab   :  { %1400 = vtanh.f32 %v1000_v50  ;;  %v1278_v54 = vmul.f32 -1.442695, %v1000_v50 }
0x15ad   :  { %1402 = vpow2.f32 %v1278_v54 }
0x15b1   :  { %v1401_v52 = vpop.eup %1400 }
0x15b2   :  { %1026 = vrot.lane.b32.xlu1 %v1401_v52, %s1456_s27 }
0x15b3   :  { %v1403_v51 = vpop.eup %1402 }
0x15b4   :  { %v1004_v5 = vadd.f32 1.0, %v1403_v51 }
0x15b6   :  { %1404 = vrcp.f32 %v1004_v5  ;;  %v1016_v60 = vand.u32 2147483648, %v1004_v5  ;;  %vm1010_vm11 = vweird.f32 %v1004_v5  ;;  %v1014_v63 = vand.u32 2147483647, %v1004_v5 }
0x15b8   :  { %v1017_v18 = vor.u32 1.1754944e-38, %v1016_v60  ;;  %vm1015_vm13 = vcmp.eq.f32.partialorder %v1014_v63, 8.507059e+37 }
0x15bc   :  { %v1405_v59 = vpop.eup %1404 }
0x15bd   :  { %v1006_v55 = vmul.f32 %v1405_v59, %v1004_v5  ;;  %vm1011_vm10 = vweird.f32 %v1405_v59 }
0x15be   :  { %vm1012_vm12 = vmor %vm1010_vm11, %vm1011_vm10 }
0x15bf   :  { %v1007_v56 = vsub.f32 1.0, %v1006_v55 }
0x15c1   :  { %v1008_v57 = vmul.f32 %v1405_v59, %v1007_v56 }
0x15c3   :  { %v1009_v58 = vadd.f32 %v1405_v59, %v1008_v57 }
0x15c5   :  { %v1013_v6 = vsel %vm1012_vm12, %v1405_v59, %v1009_v58 }
0x15c6   :  { %v1018_v61 = vsel %vm1015_vm13, %v1017_v18, %v1013_v6 }
0x15c7   :  { %v1024_v53 = vmul.f32 %v1022_v1, %v1018_v61  ;;  %v1181_v1 = vld [vmem:[%s1794_s7] sm:$0xff] }
0x1624   :  { %v1027_v0 = vpop.permute.xlu1 %1026 }
0x1625   :  { %v1029_v8 = vmul.f32 %v1027_v0, %v1018_v61  ;;  %v1184_v0 = vld [vmem:[%s1794_s7 + $0x18] sm:$0xff] }
0x1626   :  { %1207 = vmatpush.msra.mxu2 %v1184_v0 }
0x1627   :  { %1031 = vrot.lane.b32.xlu0 %v1029_v8, %s1457_s28  ;;  %v1182_v8 = vld [vmem:[%s1794_s7 + $0x8] sm:$0xff] }
0x1699   :  { %v1032_v14 = vpop.permute.xlu0 %1031 }
0x169a   :  { %v1034_v2 = vadd.f32 %v1032_v14, %v1024_v53 }
0x169c   :  { %1406 = vtanh.f32 %v1034_v2  ;;  %v1092_v33 = vrot.slane %v1034_v2, 6 }
0x16a2   :  { %v1407_v3 = vpop.eup %1406 }
0x16a3   :  { %1037 = vrot.lane.b32.xlu2 %v1407_v3, %s1456_s27 }
0x16fd   :  { %v1038_v4 = vpop.permute.xlu2 %1037 }
0x16fe   :  { %v1040_v7 = vmul.f32 %v1038_v4, %v1018_v61  ;;  %v1183_v61 = vld [vmem:[%s1794_s7 + $0x10] sm:$0xff]  ;;  %v1295_v4 = vld [vmem:[%s1795_s8] ss:$0 sm:$0xff]  ;;  %s1458_s7 = smov [#allocation2]   ;;  %s1243_s8 = sshll.u32 %s1796_s9, 4  ;;  %s1244_s8 = int_to_ptr.hbm [resolvable:$true] %s1243_s8 }
0x16ff   :  { %1208 = vmatpush.msra.mxu2 %v1183_v61 }
0x1700   :  { %v1042_v9 = vrot.slane %v1040_v7, 2 }
0x1701   :  { %1209 = vmatpush.msra.mxu2 %v1182_v8 }
0x1702   :  { %1043 = vrot.lane.b32.xlu1 %v1042_v9, %s1457_s28 }
0x1703   :  { %1210 = vmatpush.msra.mxu2 %v1181_v1 }
0x1774   :  { %v1044_v10 = vpop.permute.xlu1 %1043 }
0x1775   :  { %1279 = vmatmul.msk.f32.vlgmr.msra.gmra.mxu3 %vm49_vm0, %v1044_v10 }
0x17f8   :  { %v1064_v11 = vpop.f32.mrf.mxu3 }
0x17f9   :  { %v1068_v12 = vrot.slane %v1064_v11, 4 }
0x17fb   :  { %v1070_v13 = vadd.f32 %v1068_v12, %v1743_v25 }
0x17fd   :  { %1408 = vtanh.f32 %v1070_v13  ;;  %v1280_v19 = vmul.f32 -1.442695, %v1070_v13 }
0x17ff   :  { %1410 = vpow2.f32 %v1280_v19 }
0x1803   :  { %v1409_v15 = vpop.eup %1408 }
0x1804   :  { %1096 = vrot.lane.b32.xlu0 %v1409_v15, %s1456_s27 }
0x1805   :  { %v1411_v20 = vpop.eup %1410 }
0x1806   :  { %v1074_v21 = vadd.f32 1.0, %v1411_v20 }
0x1808   :  { %1412 = vrcp.f32 %v1074_v21  ;;  %v1086_v16 = vand.u32 2147483648, %v1074_v21  ;;  %vm1080_vm15 = vweird.f32 %v1074_v21  ;;  %v1084_v26 = vand.u32 2147483647, %v1074_v21 }
0x180a   :  { %v1087_v29 = vor.u32 1.1754944e-38, %v1086_v16  ;;  %vm1085_vm2 = vcmp.eq.f32.partialorder %v1084_v26, 8.507059e+37 }
0x180e   :  { %v1413_v22 = vpop.eup %1412 }
0x180f   :  { %v1076_v23 = vmul.f32 %v1413_v22, %v1074_v21  ;;  %vm1081_vm14 = vweird.f32 %v1413_v22 }
0x1810   :  { %vm1082_vm1 = vmor %vm1080_vm15, %vm1081_vm14 }
0x1811   :  { %v1077_v24 = vsub.f32 1.0, %v1076_v23 }
0x1813   :  { %v1078_v62 = vmul.f32 %v1413_v22, %v1077_v24 }
0x1815   :  { %v1079_v27 = vadd.f32 %v1413_v22, %v1078_v62 }
0x1817   :  { %v1083_v28 = vsel %vm1082_vm1, %v1413_v22, %v1079_v27 }
0x1818   :  { %v1088_v31 = vsel %vm1085_vm2, %v1087_v29, %v1083_v28 }
0x1819   :  { %v1094_v34 = vmul.f32 %v1092_v33, %v1088_v31 }
0x1876   :  { %v1097_v30 = vpop.permute.xlu0 %1096 }
0x1877   :  { %v1099_v32 = vmul.f32 %v1097_v30, %v1088_v31 }
0x1879   :  { %1101 = vrot.lane.b32.xlu2 %v1099_v32, %s1457_s28 }
0x18d3   :  { %v1102_v36 = vpop.permute.xlu2 %1101 }
0x18d4   :  { %v1104_v37 = vadd.f32 %v1102_v36, %v1094_v34 }
0x18d6   :  { %1414 = vtanh.f32 %v1104_v37  ;;  %v1162_v58 = vrot.slane %v1104_v37, 6 }
0x18dc   :  { %v1415_v35 = vpop.eup %1414 }
0x18dd   :  { %1107 = vrot.lane.b32.xlu1 %v1415_v35, %s1456_s27 }
0x194f   :  { %v1108_v17 = vpop.permute.xlu1 %1107 }
0x1950   :  { %v1110_v38 = vmul.f32 %v1108_v17, %v1088_v31 }
0x1952   :  { %v1112_v39 = vrot.slane %v1110_v38, 4 }
0x1954   :  { %1113 = vrot.lane.b32.xlu0 %v1112_v39, %s1457_s28 }
0x19c6   :  { %v1114_v40 = vpop.permute.xlu0 %1113 }
0x19c7   :  { %1281 = vmatmul.msk.f32.vlgmr.msra.gmra.mxu1 %vm49_vm0, %v1114_v40 }
0x1a44   :  { %v1134_v41 = vpop.f32.mrf.mxu1 }
0x1a45   :  { %v1138_v42 = vrot.slane %v1134_v41, 2 }
0x1a47   :  { %v1140_v43 = vadd.f32 %v1138_v42, %v1743_v25 }
0x1a49   :  { %1416 = vtanh.f32 %v1140_v43  ;;  %v1282_v46 = vmul.f32 -1.442695, %v1140_v43 }
0x1a4b   :  { %1418 = vpow2.f32 %v1282_v46 }
0x1a4f   :  { %v1417_v45 = vpop.eup %1416 }
0x1a50   :  { %1166 = vrot.lane.b32.xlu2 %v1417_v45, %s1456_s27 }
0x1a51   :  { %v1419_v47 = vpop.eup %1418 }
0x1a52   :  { %v1144_v48 = vadd.f32 1.0, %v1419_v47 }
0x1a54   :  { %1420 = vrcp.f32 %v1144_v48  ;;  %v1156_v51 = vand.u32 2147483648, %v1144_v48  ;;  %vm1150_vm4 = vweird.f32 %v1144_v48  ;;  %v1154_v5 = vand.u32 2147483647, %v1144_v48 }
0x1a56   :  { %v1157_v59 = vor.u32 1.1754944e-38, %v1156_v51  ;;  %vm1155_vm6 = vcmp.eq.f32.partialorder %v1154_v5, 8.507059e+37 }
0x1a5a   :  { %v1421_v44 = vpop.eup %1420 }
0x1a5b   :  { %v1146_v49 = vmul.f32 %v1421_v44, %v1144_v48  ;;  %vm1151_vm3 = vweird.f32 %v1421_v44 }
0x1a5c   :  { %vm1152_vm5 = vmor %vm1150_vm4, %vm1151_vm3 }
0x1a5d   :  { %v1147_v50 = vsub.f32 1.0, %v1146_v49 }
0x1a5f   :  { %v1148_v52 = vmul.f32 %v1421_v44, %v1147_v50 }
0x1a61   :  { %v1149_v54 = vadd.f32 %v1421_v44, %v1148_v52 }
0x1a63   :  { %v1153_v25 = vsel %vm1152_vm5, %v1421_v44, %v1149_v54 }
0x1a64   :  { %v1158_v56 = vsel %vm1155_vm6, %v1157_v59, %v1153_v25 }
0x1a65   :  { %v1164_v60 = vmul.f32 %v1162_v58, %v1158_v56 }
0x1aaa   :  { %v1167_v55 = vpop.permute.xlu2 %1166 }
0x1aab   :  { %v1169_v57 = vmul.f32 %v1167_v55, %v1158_v56 }
0x1aad   :  { %1171 = vrot.lane.b32.xlu1 %v1169_v57, %s1457_s28 }
0x1b1f   :  { %v1172_v63 = vpop.permute.xlu1 %1171 }
0x1b20   :  { %v1174_v6 = vadd.f32 %v1172_v63, %v1164_v60 }
0x1b22   :  { %1422 = vtanh.f32 %v1174_v6 }
0x1b28   :  { %v1423_v18 = vpop.eup %1422 }
0x1b29   :  { %1177 = vrot.lane.b32.xlu0 %v1423_v18, %s1456_s27 }
0x1b9b   :  { %v1178_v53 = vpop.permute.xlu0 %1177 }
0x1b9c   :  { %v1180_v14 = vmul.f32 %v1178_v53, %v1158_v56 }
0x1b9e   :  { %v1190_v2 = vrot.slane %v1180_v14, 6 }
0x1ba0   :  { %1191 = vrot.lane.b32.xlu2 %v1190_v2, %s1457_s28  ;;  %s1241_s28 = sshll.u32 %s1458_s7, 4  ;;  %s1242_s28 = int_to_ptr.vmem [resolvable:$true] %s1241_s28 }
0x1bfa   :  { %v1192_v3 = vpop.permute.xlu2 %1191 }
0x1bfb   :  { %1283 = vmatmul.msk.f32.vlgmr.msra.gmra.mxu2 %vm49_vm0, %v1192_v3 }
0x1c7e   :  { %v1212_v7 = vpop.f32.mrf.mxu2 }
0x1c7f   :  { %v1213_v9 = vadd.f32 %v1295_v4, %v1212_v7 }
0x1c81   :  { %v1284_v10 = vmul.f32 -1.442695, %v1213_v9 }
0x1c83   :  { %1424 = vpow2.f32 %v1284_v10 }
0x1c89   :  { %v1425_v11 = vpop.eup %1424 }
0x1c8a   :  { %v1218_v12 = vadd.f32 1.0, %v1425_v11 }
0x1c8c   :  { %1426 = vrcp.f32 %v1218_v12  ;;  %v1230_v20 = vand.u32 2147483648, %v1218_v12  ;;  %v1228_v22 = vand.u32 2147483647, %v1218_v12  ;;  %vm1224_vm0 = vweird.f32 %v1218_v12 }
0x1c8e   :  { %v1231_v24 = vor.u32 1.1754944e-38, %v1230_v20  ;;  %vm1229_vm10 = vcmp.eq.f32.partialorder %v1228_v22, 8.507059e+37 }
0x1c92   :  { %v1427_v13 = vpop.eup %1426 }
0x1c93   :  { %v1220_v15 = vmul.f32 %v1427_v13, %v1218_v12  ;;  %vm1225_vm7 = vweird.f32 %v1427_v13 }
0x1c94   :  { %vm1226_vm8 = vmor %vm1224_vm0, %vm1225_vm7 }
0x1c95   :  { %v1221_v19 = vsub.f32 1.0, %v1220_v15 }
0x1c97   :  { %v1222_v21 = vmul.f32 %v1427_v13, %v1221_v19 }
0x1c99   :  { %v1223_v23 = vadd.f32 %v1427_v13, %v1222_v21 }
0x1c9b   :  { %v1227_v62 = vsel %vm1226_vm8, %v1427_v13, %v1223_v23 }
0x1c9c   :  { %v1232_v27 = vsel %vm1229_vm10, %v1231_v24, %v1227_v62 }
0x1c9d   :  { %1235 = vst.msk [vmem:[#allocation2] sm:$0x3] %vm1234_vm9, %v1232_v27 }
0x1c9e   :  { %1246 = dma.vmem_to_hbm [thread:$0]  %s1242_s28, 32, %s1244_s8, [#allocation3]  }
0x1c9f   :  { %1453 = dma.done.wait [#allocation3], 32  }
0x1ca0   :  { %1454 = vsyncadd [#allocation3], 4294967264 }
0x1ca1   :  { %1251 = vsyncpa [#allocation3], 1 }

</bundles_post_ra>
